<compile_context>
chip_gen: v6e
topology: v6e:2x2x1
jax: 0.10.0
libtpu: 0.0.40
codegen_flags: <defaults>
</compile_context>

<pallas_src>
import functools

import jax
import jax.numpy as jnp
from jax.experimental import pallas as pl
from jax.experimental.pallas import tpu as pltpu


# ---------------------------------------------------------------------------
# Fused CoGNN kernel (whole forward for ONE graph; grid axis = graph batch)
# ---------------------------------------------------------------------------
def _cognn_kernel(*refs, num_layers, temp, skip, history_dim, eps, has_history):
    f32 = jnp.float32
    bf16 = jnp.bfloat16

    if has_history:
        (x_ref, a_bin_ref, hist_ref, noise_ref,
         enc_W_ref, enc_b_ref, ln_g_ref, ln_b_ref,
         W1x_ref, W1h_ref, b1_ref, W2_ref, b2_ref,
         gcn_W_ref, gcn_b_ref, dec_W_ref, dec_b_ref,
         out_ref, uh_ref) = refs
    else:
        (x_ref, a_bin_ref, noise_ref,
         enc_W_ref, enc_b_ref, ln_g_ref, ln_b_ref,
         W1x_ref, b1_ref, W2_ref, b2_ref,
         gcn_W_ref, gcn_b_ref, dec_W_ref, dec_b_ref,
         out_ref, uh_ref) = refs

    n = a_bin_ref.shape[0]

    def mdot(a, b):
        # bf16 MXU matmul with f32 accumulation (native MXU path on all gens).
        return jnp.dot(a.astype(bf16), b.astype(bf16), preferred_element_type=f32)

    # Diagonal mask via 2-D broadcasted iota (1-D iota unsupported on TPU).
    # Used only by VPU selects / XLU reduces — never fed to the MXU.
    rows = jax.lax.broadcasted_iota(jnp.int32, (n, n), 0)
    cols = jax.lax.broadcasted_iota(jnp.int32, (n, n), 1)
    diag = rows == cols

    def to_row(v):
        # (n,1) column -> (1,n) row via diag-select + sublane reduce:
        # O(N^2) VPU/XLU, replaces the former O(N^3) diag matmul.
        return jnp.sum(jnp.where(diag, v, 0.0), axis=0, keepdims=True)

    a_bin = a_bin_ref[...]                                    # (n,n) edge counts

    # --- normalized binary-topology adjacency for the action nets ----------
    # D^{-1/2}(A+I)D^{-1/2}; deg = incoming-weight row-sum + 1 self-loop
    # (matches PyG gcn_norm); diagonal added via the mask, no eye matrix.
    deg_a = jnp.sum(a_bin, axis=1, keepdims=True) + 1.0
    dinv_a = jax.lax.rsqrt(deg_a)
    a_act = dinv_a * a_bin * to_row(dinv_a) + jnp.where(diag, dinv_a * dinv_a, 0.0)
    a_act_b = a_act.astype(bf16)                              # reused by all layers

    ln_g = ln_g_ref[...]
    ln_b = ln_b_ref[...]

    def layernorm(h):
        mu = jnp.mean(h, axis=-1, keepdims=True)
        var = jnp.mean((h - mu) ** 2, axis=-1, keepdims=True)
        return (h - mu) * jax.lax.rsqrt(var + eps) * ln_g + ln_b

    # --- encoder: relu(x @ W + b); dropout = identity in eval mode ---------
    h = jnp.maximum(mdot(x_ref[...], enc_W_ref[...]) + enc_b_ref[...], 0.0)

    # Merged in/out action-net weights: wide matmul + block-diagonal head.
    W1_x = W1x_ref[...]                                       # (env,   2*hid) bf16
    b1 = b1_ref[...]                                          # (1, 2*hid)
    W2 = W2_ref[...]                                          # (2*hid, 4)     bf16
    b2 = b2_ref[...]                                          # (1, 4)

    if has_history:
        # current_history is re-cloned from the ORIGINAL history each layer,
        # so its W1 contribution is constant -> hoisted out of the loop.
        hist_tail = hist_ref[...][:, (num_layers - 1) * history_dim:]
        hist_term = mdot(hist_tail, W1h_ref[...])

    inv_temp = 1.0 / temp
    uh_w = num_layers * history_dim
    uh_col = jax.lax.broadcasted_iota(jnp.int32, (n, uh_w), 1)
    # updated_history = [orig[:, -4:], act_0, ..., act_{L-2}]; accumulated in
    # registers and written once at the end (single lane-dense store).
    uh_acc = jnp.zeros((n, uh_w), f32)

    # TODO(synk): for num_layers > 8 convert this unrolled loop to
    # lax.fori_loop with dynamic gcn_W_ref[l]/noise_ref[l] indexing.
    for l in range(num_layers):
        h = layernorm(h)
        h_b = h.astype(bf16)

        # Merged action nets: logits[:, :2] -> in-net, logits[:, 2:] -> out-net
        pre = mdot(h_b, W1_x)
        if has_history:
            pre = pre + hist_term
        hid = jnp.maximum(mdot(a_act_b, pre) + b1, 0.0)
        logits = mdot(a_act_b, mdot(hid, W2)) + b2            # (n, 4)

        # Hard Gumbel-softmax forward value == one-hot argmax; ">=" keeps the
        # first-index tie-break of argmax; column 0 == "keep".
        z = (logits + noise_ref[l]) * inv_temp
        in_keep = (z[:, 0:1] >= z[:, 1:2]).astype(f32)        # (n, 1)
        out_keep = (z[:, 2:3] >= z[:, 3:4]).astype(f32)       # (n, 1)

        if l < num_layers - 1:
            # current_actions cols: [in*out, in*(1-out), (1-in)*out, (1-in)*(1-out)]
            # placed at columns [4*(l+1), 4*(l+2)) of updated_history.
            j = uh_col - (l + 1) * history_dim
            band = jnp.logical_and(j >= 0, j < history_dim)
            in_sel = jnp.where(j < 2, in_keep, 1.0 - in_keep)
            out_sel = jnp.where(jnp.bitwise_and(j, 1) == 0, out_keep, 1.0 - out_keep)
            uh_acc = uh_acc + jnp.where(band, in_sel * out_sel, 0.0)

        # Fused gated + GCN-normalized env adjacency, single elementwise pass:
        #   deg[v]     = in[v] * (A_bin @ out)[v] + 1
        #   A_env[v,u] = (in[v]*dinv[v]) * A_bin[v,u] * (out[u]*dinv[u]) + dinv[v]^2*I
        deg = in_keep * mdot(a_bin, out_keep) + 1.0           # (n,1) matvec
        dinv = jax.lax.rsqrt(deg)
        a_env = ((in_keep * dinv) * a_bin * to_row(out_keep * dinv)
                 + jnp.where(diag, dinv * dinv, 0.0))

        # Env GCN layer (dropout eval = identity, then ReLU), then skip.
        out = jnp.maximum(mdot(a_env, mdot(h_b, gcn_W_ref[l])) + gcn_b_ref[l], 0.0)
        h = h + out if skip else out

    h = layernorm(h)
    pooled = jnp.mean(h, axis=0, keepdims=True)               # batch=None -> 1 graph
    out_ref[...] = mdot(pooled, dec_W_ref[...]) + dec_b_ref[...]
    uh_ref[...] = uh_acc
    if has_history:
        uh_ref[:, 0:history_dim] = hist_tail                  # orig history tail


# ---------------------------------------------------------------------------
# Parameter init & forward wrappers
# ---------------------------------------------------------------------------
def glorot(key, shape):
    lim = jnp.sqrt(6.0 / (shape[0] + shape[1]))
    return jax.random.uniform(key, shape, jnp.float32, -lim, lim)


def init_params(key, in_dim, env_dim, act_hidden, out_dim, num_layers):
    ks = jax.random.split(key, 6 + 2 * num_layers)
    return {
        "enc_W": glorot(ks[0], (in_dim, env_dim)),
        "enc_b": jnp.zeros((env_dim,), jnp.float32),
        "dec_W": glorot(ks[1], (env_dim, out_dim)),
        "dec_b": jnp.zeros((out_dim,), jnp.float32),
        "ln_g": jnp.ones((env_dim,), jnp.float32),
        "ln_b": jnp.zeros((env_dim,), jnp.float32),
        "in_W1": glorot(ks[2], (env_dim + 4, act_hidden)),
        "in_b1": jnp.zeros((act_hidden,), jnp.float32),
        "in_W2": glorot(ks[3], (act_hidden, 2)),
        "in_b2": jnp.zeros((2,), jnp.float32),
        "out_W1": glorot(ks[4], (env_dim + 4, act_hidden)),
        "out_b1": jnp.zeros((act_hidden,), jnp.float32),
        "out_W2": glorot(ks[5], (act_hidden, 2)),
        "out_b2": jnp.zeros((2,), jnp.float32),
        "gcn_W": [glorot(ks[6 + 2 * l], (env_dim, env_dim)) for l in range(num_layers)],
        "gcn_b": [jnp.zeros((env_dim,), jnp.float32) for _ in range(num_layers)],
    }


def _dense_adjacency(edge_index, n):
    # A_bin[v, u] = #edges u -> v (multi-edge counts), matching PyG propagation.
    src, dst = edge_index[0], edge_index[1]
    return jnp.zeros((n, n), jnp.float32).at[dst, src].add(1.0)


def _per_graph_spec(shape):
    ndim = len(shape)
    return pl.BlockSpec((None,) + tuple(shape[1:]),
                        lambda g, _nd=ndim: (g,) + (0,) * (_nd - 1))


def _shared_spec(shape):
    ndim = len(shape)
    return pl.BlockSpec(tuple(shape), lambda g, _nd=ndim: (0,) * _nd)


@functools.partial(jax.jit,
                   static_argnames=("num_layers", "temp", "skip", "history_dim"))
def cognn_forward_batched(params, x, a_bin, rng_key, action_history=None, *,
                          num_layers, temp=1.0, skip=True, history_dim=4):
    """Batch of G independent graphs per pallas_call (parallel grid axis)."""
    G, N, _ = x.shape
    env_dim = params["enc_W"].shape[1]
    out_dim = params["dec_W"].shape[1]
    hid = params["in_W2"].shape[0]
    L = num_layers
    has_history = action_history is not None
    bf16 = jnp.bfloat16

    # Pre-drawn Gumbel noise for all graphs/layers: [..., :2] in-net, [..., 2:] out.
    gumbel = jax.random.gumbel(rng_key, (G, L, N, 4), jnp.float32)

    # Merged in/out action-net weights: concat W1 on output channels,
    # block-diagonal W2 head keeps the two nets independent. Matmul weights
    # are pre-cast to bf16 (halves weight DMA/VMEM; f32 accumulation in-kernel).
    W1x_cat = jnp.concatenate([params["in_W1"][:env_dim],
                               params["out_W1"][:env_dim]], axis=1).astype(bf16)
    W1h_cat = jnp.concatenate([params["in_W1"][env_dim:],
                               params["out_W1"][env_dim:]], axis=1).astype(bf16)
    b1_cat = jnp.concatenate([params["in_b1"], params["out_b1"]])[None, :]
    W2_bd = jnp.zeros((2 * hid, 4), jnp.float32)
    W2_bd = (W2_bd.at[:hid, :2].set(params["in_W2"])
                  .at[hid:, 2:].set(params["out_W2"])).astype(bf16)
    b2_cat = jnp.concatenate([params["in_b2"], params["out_b2"]])[None, :]

    gcn_W = jnp.stack(params["gcn_W"]).astype(bf16)           # (L, env, env)
    gcn_b = jnp.stack(params["gcn_b"])[:, None, :]            # (L, 1, env)

    kernel = functools.partial(
        _cognn_kernel, num_layers=L, temp=float(temp), skip=skip,
        history_dim=history_dim, eps=1e-5, has_history=has_history)

    # --- assemble inputs + specs (per-graph arrays vs. grid-shared weights) --
    inputs = [x, a_bin]
    in_specs = [_per_graph_spec(x.shape), _per_graph_spec(a_bin.shape)]
    if has_history:
        inputs.append(action_history)
        in_specs.append(_per_graph_spec(action_history.shape))
    inputs.append(gumbel)
    in_specs.append(_per_graph_spec(gumbel.shape))

    weights = [params["enc_W"].astype(bf16), params["enc_b"][None, :],
               params["ln_g"][None, :], params["ln_b"][None, :],
               W1x_cat]
    if has_history:
        weights.append(W1h_cat)
    weights += [b1_cat, W2_bd, b2_cat, gcn_W, gcn_b,
                params["dec_W"].astype(bf16), params["dec_b"][None, :]]
    inputs += weights
    in_specs += [_shared_spec(w.shape) for w in weights]

    out_shape = (jax.ShapeDtypeStruct((G, 1, out_dim), jnp.float32),
                 jax.ShapeDtypeStruct((G, N, L * history_dim), jnp.float32))
    out_specs = (_per_graph_spec((G, 1, out_dim)),
                 _per_graph_spec((G, N, L * history_dim)))

    result, updated_history = pl.pallas_call(
        kernel,
        out_shape=out_shape,
        grid=(G,),
        in_specs=in_specs,
        out_specs=out_specs,
        compiler_params=pltpu.CompilerParams(
            dimension_semantics=("parallel",),        # shard graphs over TCs
            vmem_limit_bytes=64 * 1024 * 1024),       # explicit VMEM budget
    )(*inputs)

    # calc_stats is False (edge_ratio_node_mask is None).
    # TODO(synk): calc_stats branch (per-layer edge_ratio .item()) not exercised.
    edge_ratio = -1.0 * jnp.ones((G, L), jnp.float32)
    return result, edge_ratio, updated_history


def cognn_forward(params, x, edge_index, rng_key, *, num_layers, temp=1.0,
                  skip=True, history_dim=4, action_history=None):
    """Single-graph API matching the PyTorch module's forward return shapes."""
    n = x.shape[0]
    a_bin = _dense_adjacency(edge_index, n)
    ah = None if action_history is None else action_history[None]
    result, edge_ratio, uh = cognn_forward_batched(
        params, x[None], a_bin[None], rng_key, ah,
        num_layers=num_layers, temp=temp, skip=skip, history_dim=history_dim)
    return result[0], edge_ratio[0], uh[0]


# ---------------------------------------------------------------------------
if __name__ == "__main__":
    N, IN_DIM, ENV_DIM, ACT_HIDDEN, OUT_DIM, NUM_LAYERS, G = 16, 8, 32, 16, 4, 3, 2

    key = jax.random.PRNGKey(0)
    k_param, k_x, k_gumbel = jax.random.split(key, 3)

    params = init_params(k_param, IN_DIM, ENV_DIM, ACT_HIDDEN, OUT_DIM, NUM_LAYERS)

    # Deterministic small graphs.
    idx = jnp.arange(N, dtype=jnp.int32)
    # graph 0: bidirectional ring + chords (i <-> i+4)
    src0 = jnp.concatenate([idx, (idx + 1) % N, idx[:8], (idx[:8] + 4) % N])
    dst0 = jnp.concatenate([(idx + 1) % N, idx, (idx[:8] + 4) % N, idx[:8]])
    e0 = jnp.stack([src0, dst0], axis=0)
    # graph 1: bidirectional "skip-2" ring
    src1 = jnp.concatenate([idx, (idx + 2) % N])
    dst1 = jnp.concatenate([(idx + 2) % N, idx])
    e1 = jnp.stack([src1, dst1], axis=0)

    x = jax.random.normal(k_x, (G, N, IN_DIM), jnp.float32)
    a_bin = jnp.stack([_dense_adjacency(e0, N), _dense_adjacency(e1, N)])

    # Batched path (parallel grid over graphs).
    result, edge_ratio, uh = cognn_forward_batched(
        params, x, a_bin, k_gumbel, num_layers=NUM_LAYERS)
    jax.block_until_ready((result, edge_ratio, uh))
    assert result.shape == (G, 1, OUT_DIM)
    assert edge_ratio.shape == (G, NUM_LAYERS)
    assert uh.shape == (G, N, NUM_LAYERS * 4)
    assert bool(jnp.all(jnp.isfinite(result)))

    # Single-graph path (same return shapes as the PyTorch module).
    r1, er1, uh1 = cognn_forward(params, x[0], e0, k_gumbel, num_layers=NUM_LAYERS)
    jax.block_until_ready((r1, er1, uh1))
    assert r1.shape == (1, OUT_DIM)
    assert er1.shape == (NUM_LAYERS,)
    assert uh1.shape == (N, NUM_LAYERS * 4)

    print("KERNEL_OK")
</pallas_src>

<mosaic_0001>
module attributes {stable_mosaic.version = 11 : i64} {
  func.func @_cognn_kernel(%arg0: i32, %arg1: memref<1x16x8xf32, #tpu.memory_space<vmem>>, %arg2: memref<1x16x16xf32, #tpu.memory_space<vmem>>, %arg3: memref<1x3x16x4xf32, #tpu.memory_space<vmem>>, %arg4: memref<8x32xbf16, #tpu.memory_space<vmem>>, %arg5: memref<1x32xf32, #tpu.memory_space<vmem>>, %arg6: memref<1x32xf32, #tpu.memory_space<vmem>>, %arg7: memref<1x32xf32, #tpu.memory_space<vmem>>, %arg8: memref<32x32xbf16, #tpu.memory_space<vmem>>, %arg9: memref<1x32xf32, #tpu.memory_space<vmem>>, %arg10: memref<32x4xbf16, #tpu.memory_space<vmem>>, %arg11: memref<1x4xf32, #tpu.memory_space<vmem>>, %arg12: memref<3x32x32xbf16, #tpu.memory_space<vmem>>, %arg13: memref<3x1x32xf32, #tpu.memory_space<vmem>>, %arg14: memref<32x4xbf16, #tpu.memory_space<vmem>>, %arg15: memref<1x4xf32, #tpu.memory_space<vmem>>, %arg16: memref<1x1x4xf32, #tpu.memory_space<vmem>>, %arg17: memref<1x16x12xf32, #tpu.memory_space<vmem>>) attributes {dimension_semantics = [#tpu.dimension_semantics<parallel>], iteration_bounds = array<i64: 2>, scalar_prefetch = 0 : i64, scratch_operands = 0 : i64, tpu.core_type = #tpu.core_type<tc>, window_params = [{transform_indices = @transform_0, window_bounds = array<i64: 1, 16, 8>}, {transform_indices = @transform_1, window_bounds = array<i64: 1, 16, 16>}, {transform_indices = @transform_2, window_bounds = array<i64: 1, 3, 16, 4>}, {pipeline_mode = #tpu.pipeline_mode<synchronous>, transform_indices = @transform_3, window_bounds = array<i64: 8, 32>}, {pipeline_mode = #tpu.pipeline_mode<synchronous>, transform_indices = @transform_4, window_bounds = array<i64: 1, 32>}, {pipeline_mode = #tpu.pipeline_mode<synchronous>, transform_indices = @transform_5, window_bounds = array<i64: 1, 32>}, {pipeline_mode = #tpu.pipeline_mode<synchronous>, transform_indices = @transform_6, window_bounds = array<i64: 1, 32>}, {pipeline_mode = #tpu.pipeline_mode<synchronous>, transform_indices = @transform_7, window_bounds = array<i64: 32, 32>}, {pipeline_mode = #tpu.pipeline_mode<synchronous>, transform_indices = @transform_8, window_bounds = array<i64: 1, 32>}, {pipeline_mode = #tpu.pipeline_mode<synchronous>, transform_indices = @transform_9, window_bounds = array<i64: 32, 4>}, {pipeline_mode = #tpu.pipeline_mode<synchronous>, transform_indices = @transform_10, window_bounds = array<i64: 1, 4>}, {pipeline_mode = #tpu.pipeline_mode<synchronous>, transform_indices = @transform_11, window_bounds = array<i64: 3, 32, 32>}, {pipeline_mode = #tpu.pipeline_mode<synchronous>, transform_indices = @transform_12, window_bounds = array<i64: 3, 1, 32>}, {pipeline_mode = #tpu.pipeline_mode<synchronous>, transform_indices = @transform_13, window_bounds = array<i64: 32, 4>}, {pipeline_mode = #tpu.pipeline_mode<synchronous>, transform_indices = @transform_14, window_bounds = array<i64: 1, 4>}, {transform_indices = @transform_15, window_bounds = array<i64: 1, 1, 4>}, {transform_indices = @transform_16, window_bounds = array<i64: 1, 16, 12>}]} {
    %0 = tpu.iota {dimensions = array<i32: 0>} : vector<16x16xi32>
    %1 = tpu.iota {dimensions = array<i32: 1>} : vector<16x16xi32>
    %2 = arith.cmpi eq, %0, %1 : vector<16x16xi32>
    %c0 = arith.constant 0 : index
    %c0_0 = arith.constant 0 : index
    %c0_1 = arith.constant 0 : index
    %3 = vector.load %arg2[%c0, %c0_0, %c0_1] : memref<1x16x16xf32, #tpu.memory_space<vmem>>, vector<1x16x16xf32>
    %4 = vector.shape_cast %3 : vector<1x16x16xf32> to vector<16x16xf32>
    %cst = arith.constant dense<0.000000e+00> : vector<16xf32>
    %5 = vector.multi_reduction <add>, %4, %cst [1] : vector<16x16xf32> to vector<16xf32>
    %6 = vector.shape_cast %5 : vector<16xf32> to vector<16x1xf32>
    %cst_2 = arith.constant 1.000000e+00 : f32
    %7 = vector.broadcast %cst_2 : f32 to vector<16x1xf32>
    %8 = arith.addf %6, %7 : vector<16x1xf32>
    %9 = math.rsqrt %8 : vector<16x1xf32>
    %10 = vector.broadcast %9 : vector<16x1xf32> to vector<16x16xf32>
    %11 = arith.mulf %10, %4 : vector<16x16xf32>
    %cst_3 = arith.constant 0.000000e+00 : f32
    %12 = vector.shape_cast %9 : vector<16x1xf32> to vector<16x1xf32>
    %13 = vector.broadcast %12 : vector<16x1xf32> to vector<16x16xf32>
    %14 = vector.broadcast %cst_3 : f32 to vector<16x16xf32>
    %15 = arith.select %2, %13, %14 : vector<16x16xi1>, vector<16x16xf32>
    %cst_4 = arith.constant dense<0.000000e+00> : vector<16xf32>
    %16 = vector.multi_reduction <add>, %15, %cst_4 [0] : vector<16x16xf32> to vector<16xf32>
    %17 = vector.shape_cast %16 : vector<16xf32> to vector<1x16xf32>
    %18 = vector.broadcast %17 : vector<1x16xf32> to vector<16x16xf32>
    %19 = arith.mulf %11, %18 : vector<16x16xf32>
    %20 = arith.mulf %9, %9 : vector<16x1xf32>
    %cst_5 = arith.constant 0.000000e+00 : f32
    %21 = vector.shape_cast %20 : vector<16x1xf32> to vector<16x1xf32>
    %22 = vector.broadcast %21 : vector<16x1xf32> to vector<16x16xf32>
    %23 = vector.broadcast %cst_5 : f32 to vector<16x16xf32>
    %24 = arith.select %2, %22, %23 : vector<16x16xi1>, vector<16x16xf32>
    %25 = arith.addf %19, %24 : vector<16x16xf32>
    %26 = arith.truncf %25 : vector<16x16xf32> to vector<16x16xbf16>
    %c0_6 = arith.constant 0 : index
    %c0_7 = arith.constant 0 : index
    %27 = vector.load %arg6[%c0_6, %c0_7] : memref<1x32xf32, #tpu.memory_space<vmem>>, vector<1x32xf32>
    %c0_8 = arith.constant 0 : index
    %c0_9 = arith.constant 0 : index
    %28 = vector.load %arg7[%c0_8, %c0_9] : memref<1x32xf32, #tpu.memory_space<vmem>>, vector<1x32xf32>
    %c0_10 = arith.constant 0 : index
    %c0_11 = arith.constant 0 : index
    %c0_12 = arith.constant 0 : index
    %29 = vector.load %arg1[%c0_10, %c0_11, %c0_12] : memref<1x16x8xf32, #tpu.memory_space<vmem>>, vector<1x16x8xf32>
    %30 = vector.shape_cast %29 : vector<1x16x8xf32> to vector<16x8xf32>
    %c0_13 = arith.constant 0 : index
    %c0_14 = arith.constant 0 : index
    %31 = vector.load %arg4[%c0_13, %c0_14] : memref<8x32xbf16, #tpu.memory_space<vmem>>, vector<8x32xbf16>
    %32 = arith.truncf %30 : vector<16x8xf32> to vector<16x8xbf16>
    %cst_15 = arith.constant dense<0.000000e+00> : vector<16x32xf32>
    %33 = tpu.matmul %32, %31, %cst_15 {dimension_numbers = #tpu.dot_dimension_numbers<[1], [0], [0], [1], [0, 0, 1, 1], [], []>} : vector<16x8xbf16>, vector<8x32xbf16>, vector<16x32xf32> -> vector<16x32xf32>
    %c0_16 = arith.constant 0 : index
    %c0_17 = arith.constant 0 : index
    %34 = vector.load %arg5[%c0_16, %c0_17] : memref<1x32xf32, #tpu.memory_space<vmem>>, vector<1x32xf32>
    %35 = vector.broadcast %34 : vector<1x32xf32> to vector<16x32xf32>
    %36 = arith.addf %33, %35 : vector<16x32xf32>
    %cst_18 = arith.constant 0.000000e+00 : f32
    %37 = vector.broadcast %cst_18 : f32 to vector<16x32xf32>
    %38 = arith.maximumf %36, %37 : vector<16x32xf32>
    %c0_19 = arith.constant 0 : index
    %c0_20 = arith.constant 0 : index
    %39 = vector.load %arg8[%c0_19, %c0_20] : memref<32x32xbf16, #tpu.memory_space<vmem>>, vector<32x32xbf16>
    %c0_21 = arith.constant 0 : index
    %c0_22 = arith.constant 0 : index
    %40 = vector.load %arg9[%c0_21, %c0_22] : memref<1x32xf32, #tpu.memory_space<vmem>>, vector<1x32xf32>
    %c0_23 = arith.constant 0 : index
    %c0_24 = arith.constant 0 : index
    %41 = vector.load %arg10[%c0_23, %c0_24] : memref<32x4xbf16, #tpu.memory_space<vmem>>, vector<32x4xbf16>
    %c0_25 = arith.constant 0 : index
    %c0_26 = arith.constant 0 : index
    %42 = vector.load %arg11[%c0_25, %c0_26] : memref<1x4xf32, #tpu.memory_space<vmem>>, vector<1x4xf32>
    %43 = tpu.iota {dimensions = array<i32: 1>} : vector<16x12xi32>
    %cst_27 = arith.constant 0.000000e+00 : f32
    %44 = vector.broadcast %cst_27 : f32 to vector<16x12xf32>
    %cst_28 = arith.constant dense<0.000000e+00> : vector<16xf32>
    %45 = vector.multi_reduction <add>, %38, %cst_28 [1] : vector<16x32xf32> to vector<16xf32>
    %46 = vector.shape_cast %45 : vector<16xf32> to vector<16x1xf32>
    %cst_29 = arith.constant 3.200000e+01 : f32
    %47 = vector.broadcast %cst_29 : f32 to vector<16x1xf32>
    %48 = arith.divf %46, %47 : vector<16x1xf32>
    %49 = vector.broadcast %48 : vector<16x1xf32> to vector<16x32xf32>
    %50 = arith.subf %38, %49 : vector<16x32xf32>
    %51 = arith.mulf %50, %50 : vector<16x32xf32>
    %cst_30 = arith.constant dense<0.000000e+00> : vector<16xf32>
    %52 = vector.multi_reduction <add>, %51, %cst_30 [1] : vector<16x32xf32> to vector<16xf32>
    %53 = vector.shape_cast %52 : vector<16xf32> to vector<16x1xf32>
    %cst_31 = arith.constant 3.200000e+01 : f32
    %54 = vector.broadcast %cst_31 : f32 to vector<16x1xf32>
    %55 = arith.divf %53, %54 : vector<16x1xf32>
    %56 = vector.broadcast %48 : vector<16x1xf32> to vector<16x32xf32>
    %57 = arith.subf %38, %56 : vector<16x32xf32>
    %cst_32 = arith.constant 9.99999974E-6 : f32
    %58 = vector.broadcast %cst_32 : f32 to vector<16x1xf32>
    %59 = arith.addf %55, %58 : vector<16x1xf32>
    %60 = math.rsqrt %59 : vector<16x1xf32>
    %61 = vector.broadcast %60 : vector<16x1xf32> to vector<16x32xf32>
    %62 = arith.mulf %57, %61 : vector<16x32xf32>
    %63 = vector.broadcast %27 : vector<1x32xf32> to vector<16x32xf32>
    %64 = arith.mulf %62, %63 : vector<16x32xf32>
    %65 = vector.broadcast %28 : vector<1x32xf32> to vector<16x32xf32>
    %66 = arith.addf %64, %65 : vector<16x32xf32>
    %67 = arith.truncf %66 : vector<16x32xf32> to vector<16x32xbf16>
    %cst_33 = arith.constant dense<0.000000e+00> : vector<16x32xf32>
    %68 = tpu.matmul %67, %39, %cst_33 {dimension_numbers = #tpu.dot_dimension_numbers<[1], [0], [0], [1], [0, 0, 1, 1], [], []>} : vector<16x32xbf16>, vector<32x32xbf16>, vector<16x32xf32> -> vector<16x32xf32>
    %69 = arith.truncf %68 : vector<16x32xf32> to vector<16x32xbf16>
    %cst_34 = arith.constant dense<0.000000e+00> : vector<16x32xf32>
    %70 = tpu.matmul %26, %69, %cst_34 {dimension_numbers = #tpu.dot_dimension_numbers<[1], [0], [0], [1], [0, 0, 1, 1], [], []>} : vector<16x16xbf16>, vector<16x32xbf16>, vector<16x32xf32> -> vector<16x32xf32>
    %71 = vector.broadcast %40 : vector<1x32xf32> to vector<16x32xf32>
    %72 = arith.addf %70, %71 : vector<16x32xf32>
    %cst_35 = arith.constant 0.000000e+00 : f32
    %73 = vector.broadcast %cst_35 : f32 to vector<16x32xf32>
    %74 = arith.maximumf %72, %73 : vector<16x32xf32>
    %75 = arith.truncf %74 : vector<16x32xf32> to vector<16x32xbf16>
    %cst_36 = arith.constant dense<0.000000e+00> : vector<16x4xf32>
    %76 = tpu.matmul %75, %41, %cst_36 {dimension_numbers = #tpu.dot_dimension_numbers<[1], [0], [0], [1], [0, 0, 1, 1], [], []>} : vector<16x32xbf16>, vector<32x4xbf16>, vector<16x4xf32> -> vector<16x4xf32>
    %77 = arith.truncf %76 : vector<16x4xf32> to vector<16x4xbf16>
    %cst_37 = arith.constant dense<0.000000e+00> : vector<16x4xf32>
    %78 = tpu.matmul %26, %77, %cst_37 {dimension_numbers = #tpu.dot_dimension_numbers<[1], [0], [0], [1], [0, 0, 1, 1], [], []>} : vector<16x16xbf16>, vector<16x4xbf16>, vector<16x4xf32> -> vector<16x4xf32>
    %79 = vector.broadcast %42 : vector<1x4xf32> to vector<16x4xf32>
    %80 = arith.addf %78, %79 : vector<16x4xf32>
    %c0_38 = arith.constant 0 : index
    %c0_39 = arith.constant 0 : index
    %c0_40 = arith.constant 0 : index
    %c0_41 = arith.constant 0 : index
    %81 = vector.load %arg3[%c0_38, %c0_39, %c0_40, %c0_41] : memref<1x3x16x4xf32, #tpu.memory_space<vmem>>, vector<1x1x16x4xf32>
    %82 = vector.shape_cast %81 : vector<1x1x16x4xf32> to vector<16x4xf32>
    %83 = arith.addf %80, %82 : vector<16x4xf32>
    %cst_42 = arith.constant 1.000000e+00 : f32
    %84 = vector.broadcast %cst_42 : f32 to vector<16x4xf32>
    %85 = arith.mulf %83, %84 : vector<16x4xf32>
    %86 = vector.extract_strided_slice %85 {offsets = [0, 0], sizes = [16, 1], strides = [1, 1]} : vector<16x4xf32> to vector<16x1xf32>
    %87 = vector.extract_strided_slice %85 {offsets = [0, 1], sizes = [16, 1], strides = [1, 1]} : vector<16x4xf32> to vector<16x1xf32>
    %88 = arith.cmpf oge, %86, %87 : vector<16x1xf32>
    %89 = arith.extui %88 : vector<16x1xi1> to vector<16x1xi32>
    %90 = arith.sitofp %89 : vector<16x1xi32> to vector<16x1xf32>
    %91 = vector.extract_strided_slice %85 {offsets = [0, 2], sizes = [16, 1], strides = [1, 1]} : vector<16x4xf32> to vector<16x1xf32>
    %92 = vector.extract_strided_slice %85 {offsets = [0, 3], sizes = [16, 1], strides = [1, 1]} : vector<16x4xf32> to vector<16x1xf32>
    %93 = arith.cmpf oge, %91, %92 : vector<16x1xf32>
    %94 = arith.extui %93 : vector<16x1xi1> to vector<16x1xi32>
    %95 = arith.sitofp %94 : vector<16x1xi32> to vector<16x1xf32>
    %c4_i32 = arith.constant 4 : i32
    %96 = vector.broadcast %c4_i32 : i32 to vector<16x12xi32>
    %97 = arith.subi %43, %96 : vector<16x12xi32>
    %c0_i32 = arith.constant 0 : i32
    %98 = vector.broadcast %c0_i32 : i32 to vector<16x12xi32>
    %99 = arith.cmpi sge, %97, %98 : vector<16x12xi32>
    %c4_i32_43 = arith.constant 4 : i32
    %100 = vector.broadcast %c4_i32_43 : i32 to vector<16x12xi32>
    %101 = arith.cmpi slt, %97, %100 : vector<16x12xi32>
    %102 = arith.andi %99, %101 : vector<16x12xi1>
    %c2_i32 = arith.constant 2 : i32
    %103 = vector.broadcast %c2_i32 : i32 to vector<16x12xi32>
    %104 = arith.cmpi slt, %97, %103 : vector<16x12xi32>
    %cst_44 = arith.constant 1.000000e+00 : f32
    %105 = vector.broadcast %cst_44 : f32 to vector<16x1xf32>
    %106 = arith.subf %105, %90 : vector<16x1xf32>
    %107 = vector.shape_cast %90 : vector<16x1xf32> to vector<16x1xf32>
    %108 = vector.broadcast %107 : vector<16x1xf32> to vector<16x12xf32>
    %109 = vector.shape_cast %106 : vector<16x1xf32> to vector<16x1xf32>
    %110 = vector.broadcast %109 : vector<16x1xf32> to vector<16x12xf32>
    %111 = arith.select %104, %108, %110 : vector<16x12xi1>, vector<16x12xf32>
    %c1_i32 = arith.constant 1 : i32
    %112 = vector.broadcast %c1_i32 : i32 to vector<16x12xi32>
    %113 = arith.andi %97, %112 : vector<16x12xi32>
    %c0_i32_45 = arith.constant 0 : i32
    %114 = vector.broadcast %c0_i32_45 : i32 to vector<16x12xi32>
    %115 = arith.cmpi eq, %113, %114 : vector<16x12xi32>
    %cst_46 = arith.constant 1.000000e+00 : f32
    %116 = vector.broadcast %cst_46 : f32 to vector<16x1xf32>
    %117 = arith.subf %116, %95 : vector<16x1xf32>
    %118 = vector.shape_cast %95 : vector<16x1xf32> to vector<16x1xf32>
    %119 = vector.broadcast %118 : vector<16x1xf32> to vector<16x12xf32>
    %120 = vector.shape_cast %117 : vector<16x1xf32> to vector<16x1xf32>
    %121 = vector.broadcast %120 : vector<16x1xf32> to vector<16x12xf32>
    %122 = arith.select %115, %119, %121 : vector<16x12xi1>, vector<16x12xf32>
    %123 = arith.mulf %111, %122 : vector<16x12xf32>
    %cst_47 = arith.constant 0.000000e+00 : f32
    %124 = vector.broadcast %cst_47 : f32 to vector<16x12xf32>
    %125 = arith.select %102, %123, %124 : vector<16x12xi1>, vector<16x12xf32>
    %126 = arith.addf %44, %125 : vector<16x12xf32>
    %127 = arith.truncf %4 : vector<16x16xf32> to vector<16x16xbf16>
    %128 = arith.truncf %95 : vector<16x1xf32> to vector<16x1xbf16>
    %cst_48 = arith.constant dense<0.000000e+00> : vector<16x1xf32>
    %129 = tpu.matmul %127, %128, %cst_48 {dimension_numbers = #tpu.dot_dimension_numbers<[1], [0], [0], [1], [0, 0, 1, 1], [], []>} : vector<16x16xbf16>, vector<16x1xbf16>, vector<16x1xf32> -> vector<16x1xf32>
    %130 = arith.mulf %90, %129 : vector<16x1xf32>
    %cst_49 = arith.constant 1.000000e+00 : f32
    %131 = vector.broadcast %cst_49 : f32 to vector<16x1xf32>
    %132 = arith.addf %130, %131 : vector<16x1xf32>
    %133 = math.rsqrt %132 : vector<16x1xf32>
    %134 = arith.mulf %90, %133 : vector<16x1xf32>
    %135 = vector.broadcast %134 : vector<16x1xf32> to vector<16x16xf32>
    %136 = arith.mulf %135, %4 : vector<16x16xf32>
    %137 = arith.mulf %95, %133 : vector<16x1xf32>
    %cst_50 = arith.constant 0.000000e+00 : f32
    %138 = vector.shape_cast %137 : vector<16x1xf32> to vector<16x1xf32>
    %139 = vector.broadcast %138 : vector<16x1xf32> to vector<16x16xf32>
    %140 = vector.broadcast %cst_50 : f32 to vector<16x16xf32>
    %141 = arith.select %2, %139, %140 : vector<16x16xi1>, vector<16x16xf32>
    %cst_51 = arith.constant dense<0.000000e+00> : vector<16xf32>
    %142 = vector.multi_reduction <add>, %141, %cst_51 [0] : vector<16x16xf32> to vector<16xf32>
    %143 = vector.shape_cast %142 : vector<16xf32> to vector<1x16xf32>
    %144 = vector.broadcast %143 : vector<1x16xf32> to vector<16x16xf32>
    %145 = arith.mulf %136, %144 : vector<16x16xf32>
    %146 = arith.mulf %133, %133 : vector<16x1xf32>
    %cst_52 = arith.constant 0.000000e+00 : f32
    %147 = vector.shape_cast %146 : vector<16x1xf32> to vector<16x1xf32>
    %148 = vector.broadcast %147 : vector<16x1xf32> to vector<16x16xf32>
    %149 = vector.broadcast %cst_52 : f32 to vector<16x16xf32>
    %150 = arith.select %2, %148, %149 : vector<16x16xi1>, vector<16x16xf32>
    %151 = arith.addf %145, %150 : vector<16x16xf32>
    %c0_53 = arith.constant 0 : index
    %c0_54 = arith.constant 0 : index
    %c0_55 = arith.constant 0 : index
    %152 = vector.load %arg12[%c0_53, %c0_54, %c0_55] : memref<3x32x32xbf16, #tpu.memory_space<vmem>>, vector<1x32x32xbf16>
    %153 = vector.shape_cast %152 : vector<1x32x32xbf16> to vector<32x32xbf16>
    %cst_56 = arith.constant dense<0.000000e+00> : vector<16x32xf32>
    %154 = tpu.matmul %67, %153, %cst_56 {dimension_numbers = #tpu.dot_dimension_numbers<[1], [0], [0], [1], [0, 0, 1, 1], [], []>} : vector<16x32xbf16>, vector<32x32xbf16>, vector<16x32xf32> -> vector<16x32xf32>
    %155 = arith.truncf %151 : vector<16x16xf32> to vector<16x16xbf16>
    %156 = arith.truncf %154 : vector<16x32xf32> to vector<16x32xbf16>
    %cst_57 = arith.constant dense<0.000000e+00> : vector<16x32xf32>
    %157 = tpu.matmul %155, %156, %cst_57 {dimension_numbers = #tpu.dot_dimension_numbers<[1], [0], [0], [1], [0, 0, 1, 1], [], []>} : vector<16x16xbf16>, vector<16x32xbf16>, vector<16x32xf32> -> vector<16x32xf32>
    %c0_58 = arith.constant 0 : index
    %c0_59 = arith.constant 0 : index
    %c0_60 = arith.constant 0 : index
    %158 = vector.load %arg13[%c0_58, %c0_59, %c0_60] : memref<3x1x32xf32, #tpu.memory_space<vmem>>, vector<1x1x32xf32>
    %159 = vector.shape_cast %158 : vector<1x1x32xf32> to vector<1x32xf32>
    %160 = vector.broadcast %159 : vector<1x32xf32> to vector<16x32xf32>
    %161 = arith.addf %157, %160 : vector<16x32xf32>
    %cst_61 = arith.constant 0.000000e+00 : f32
    %162 = vector.broadcast %cst_61 : f32 to vector<16x32xf32>
    %163 = arith.maximumf %161, %162 : vector<16x32xf32>
    %164 = arith.addf %66, %163 : vector<16x32xf32>
    %cst_62 = arith.constant dense<0.000000e+00> : vector<16xf32>
    %165 = vector.multi_reduction <add>, %164, %cst_62 [1] : vector<16x32xf32> to vector<16xf32>
    %166 = vector.shape_cast %165 : vector<16xf32> to vector<16x1xf32>
    %cst_63 = arith.constant 3.200000e+01 : f32
    %167 = vector.broadcast %cst_63 : f32 to vector<16x1xf32>
    %168 = arith.divf %166, %167 : vector<16x1xf32>
    %169 = vector.broadcast %168 : vector<16x1xf32> to vector<16x32xf32>
    %170 = arith.subf %164, %169 : vector<16x32xf32>
    %171 = arith.mulf %170, %170 : vector<16x32xf32>
    %cst_64 = arith.constant dense<0.000000e+00> : vector<16xf32>
    %172 = vector.multi_reduction <add>, %171, %cst_64 [1] : vector<16x32xf32> to vector<16xf32>
    %173 = vector.shape_cast %172 : vector<16xf32> to vector<16x1xf32>
    %cst_65 = arith.constant 3.200000e+01 : f32
    %174 = vector.broadcast %cst_65 : f32 to vector<16x1xf32>
    %175 = arith.divf %173, %174 : vector<16x1xf32>
    %176 = vector.broadcast %168 : vector<16x1xf32> to vector<16x32xf32>
    %177 = arith.subf %164, %176 : vector<16x32xf32>
    %cst_66 = arith.constant 9.99999974E-6 : f32
    %178 = vector.broadcast %cst_66 : f32 to vector<16x1xf32>
    %179 = arith.addf %175, %178 : vector<16x1xf32>
    %180 = math.rsqrt %179 : vector<16x1xf32>
    %181 = vector.broadcast %180 : vector<16x1xf32> to vector<16x32xf32>
    %182 = arith.mulf %177, %181 : vector<16x32xf32>
    %183 = vector.broadcast %27 : vector<1x32xf32> to vector<16x32xf32>
    %184 = arith.mulf %182, %183 : vector<16x32xf32>
    %185 = vector.broadcast %28 : vector<1x32xf32> to vector<16x32xf32>
    %186 = arith.addf %184, %185 : vector<16x32xf32>
    %187 = arith.truncf %186 : vector<16x32xf32> to vector<16x32xbf16>
    %cst_67 = arith.constant dense<0.000000e+00> : vector<16x32xf32>
    %188 = tpu.matmul %187, %39, %cst_67 {dimension_numbers = #tpu.dot_dimension_numbers<[1], [0], [0], [1], [0, 0, 1, 1], [], []>} : vector<16x32xbf16>, vector<32x32xbf16>, vector<16x32xf32> -> vector<16x32xf32>
    %189 = arith.truncf %188 : vector<16x32xf32> to vector<16x32xbf16>
    %cst_68 = arith.constant dense<0.000000e+00> : vector<16x32xf32>
    %190 = tpu.matmul %26, %189, %cst_68 {dimension_numbers = #tpu.dot_dimension_numbers<[1], [0], [0], [1], [0, 0, 1, 1], [], []>} : vector<16x16xbf16>, vector<16x32xbf16>, vector<16x32xf32> -> vector<16x32xf32>
    %191 = vector.broadcast %40 : vector<1x32xf32> to vector<16x32xf32>
    %192 = arith.addf %190, %191 : vector<16x32xf32>
    %cst_69 = arith.constant 0.000000e+00 : f32
    %193 = vector.broadcast %cst_69 : f32 to vector<16x32xf32>
    %194 = arith.maximumf %192, %193 : vector<16x32xf32>
    %195 = arith.truncf %194 : vector<16x32xf32> to vector<16x32xbf16>
    %cst_70 = arith.constant dense<0.000000e+00> : vector<16x4xf32>
    %196 = tpu.matmul %195, %41, %cst_70 {dimension_numbers = #tpu.dot_dimension_numbers<[1], [0], [0], [1], [0, 0, 1, 1], [], []>} : vector<16x32xbf16>, vector<32x4xbf16>, vector<16x4xf32> -> vector<16x4xf32>
    %197 = arith.truncf %196 : vector<16x4xf32> to vector<16x4xbf16>
    %cst_71 = arith.constant dense<0.000000e+00> : vector<16x4xf32>
    %198 = tpu.matmul %26, %197, %cst_71 {dimension_numbers = #tpu.dot_dimension_numbers<[1], [0], [0], [1], [0, 0, 1, 1], [], []>} : vector<16x16xbf16>, vector<16x4xbf16>, vector<16x4xf32> -> vector<16x4xf32>
    %199 = vector.broadcast %42 : vector<1x4xf32> to vector<16x4xf32>
    %200 = arith.addf %198, %199 : vector<16x4xf32>
    %c0_72 = arith.constant 0 : index
    %c1 = arith.constant 1 : index
    %c0_73 = arith.constant 0 : index
    %c0_74 = arith.constant 0 : index
    %201 = vector.load %arg3[%c0_72, %c1, %c0_73, %c0_74] : memref<1x3x16x4xf32, #tpu.memory_space<vmem>>, vector<1x1x16x4xf32>
    %202 = vector.shape_cast %201 : vector<1x1x16x4xf32> to vector<16x4xf32>
    %203 = arith.addf %200, %202 : vector<16x4xf32>
    %cst_75 = arith.constant 1.000000e+00 : f32
    %204 = vector.broadcast %cst_75 : f32 to vector<16x4xf32>
    %205 = arith.mulf %203, %204 : vector<16x4xf32>
    %206 = vector.extract_strided_slice %205 {offsets = [0, 0], sizes = [16, 1], strides = [1, 1]} : vector<16x4xf32> to vector<16x1xf32>
    %207 = vector.extract_strided_slice %205 {offsets = [0, 1], sizes = [16, 1], strides = [1, 1]} : vector<16x4xf32> to vector<16x1xf32>
    %208 = arith.cmpf oge, %206, %207 : vector<16x1xf32>
    %209 = arith.extui %208 : vector<16x1xi1> to vector<16x1xi32>
    %210 = arith.sitofp %209 : vector<16x1xi32> to vector<16x1xf32>
    %211 = vector.extract_strided_slice %205 {offsets = [0, 2], sizes = [16, 1], strides = [1, 1]} : vector<16x4xf32> to vector<16x1xf32>
    %212 = vector.extract_strided_slice %205 {offsets = [0, 3], sizes = [16, 1], strides = [1, 1]} : vector<16x4xf32> to vector<16x1xf32>
    %213 = arith.cmpf oge, %211, %212 : vector<16x1xf32>
    %214 = arith.extui %213 : vector<16x1xi1> to vector<16x1xi32>
    %215 = arith.sitofp %214 : vector<16x1xi32> to vector<16x1xf32>
    %c8_i32 = arith.constant 8 : i32
    %216 = vector.broadcast %c8_i32 : i32 to vector<16x12xi32>
    %217 = arith.subi %43, %216 : vector<16x12xi32>
    %c0_i32_76 = arith.constant 0 : i32
    %218 = vector.broadcast %c0_i32_76 : i32 to vector<16x12xi32>
    %219 = arith.cmpi sge, %217, %218 : vector<16x12xi32>
    %c4_i32_77 = arith.constant 4 : i32
    %220 = vector.broadcast %c4_i32_77 : i32 to vector<16x12xi32>
    %221 = arith.cmpi slt, %217, %220 : vector<16x12xi32>
    %222 = arith.andi %219, %221 : vector<16x12xi1>
    %c2_i32_78 = arith.constant 2 : i32
    %223 = vector.broadcast %c2_i32_78 : i32 to vector<16x12xi32>
    %224 = arith.cmpi slt, %217, %223 : vector<16x12xi32>
    %cst_79 = arith.constant 1.000000e+00 : f32
    %225 = vector.broadcast %cst_79 : f32 to vector<16x1xf32>
    %226 = arith.subf %225, %210 : vector<16x1xf32>
    %227 = vector.shape_cast %210 : vector<16x1xf32> to vector<16x1xf32>
    %228 = vector.broadcast %227 : vector<16x1xf32> to vector<16x12xf32>
    %229 = vector.shape_cast %226 : vector<16x1xf32> to vector<16x1xf32>
    %230 = vector.broadcast %229 : vector<16x1xf32> to vector<16x12xf32>
    %231 = arith.select %224, %228, %230 : vector<16x12xi1>, vector<16x12xf32>
    %c1_i32_80 = arith.constant 1 : i32
    %232 = vector.broadcast %c1_i32_80 : i32 to vector<16x12xi32>
    %233 = arith.andi %217, %232 : vector<16x12xi32>
    %c0_i32_81 = arith.constant 0 : i32
    %234 = vector.broadcast %c0_i32_81 : i32 to vector<16x12xi32>
    %235 = arith.cmpi eq, %233, %234 : vector<16x12xi32>
    %cst_82 = arith.constant 1.000000e+00 : f32
    %236 = vector.broadcast %cst_82 : f32 to vector<16x1xf32>
    %237 = arith.subf %236, %215 : vector<16x1xf32>
    %238 = vector.shape_cast %215 : vector<16x1xf32> to vector<16x1xf32>
    %239 = vector.broadcast %238 : vector<16x1xf32> to vector<16x12xf32>
    %240 = vector.shape_cast %237 : vector<16x1xf32> to vector<16x1xf32>
    %241 = vector.broadcast %240 : vector<16x1xf32> to vector<16x12xf32>
    %242 = arith.select %235, %239, %241 : vector<16x12xi1>, vector<16x12xf32>
    %243 = arith.mulf %231, %242 : vector<16x12xf32>
    %cst_83 = arith.constant 0.000000e+00 : f32
    %244 = vector.broadcast %cst_83 : f32 to vector<16x12xf32>
    %245 = arith.select %222, %243, %244 : vector<16x12xi1>, vector<16x12xf32>
    %246 = arith.addf %126, %245 : vector<16x12xf32>
    %247 = arith.truncf %4 : vector<16x16xf32> to vector<16x16xbf16>
    %248 = arith.truncf %215 : vector<16x1xf32> to vector<16x1xbf16>
    %cst_84 = arith.constant dense<0.000000e+00> : vector<16x1xf32>
    %249 = tpu.matmul %247, %248, %cst_84 {dimension_numbers = #tpu.dot_dimension_numbers<[1], [0], [0], [1], [0, 0, 1, 1], [], []>} : vector<16x16xbf16>, vector<16x1xbf16>, vector<16x1xf32> -> vector<16x1xf32>
    %250 = arith.mulf %210, %249 : vector<16x1xf32>
    %cst_85 = arith.constant 1.000000e+00 : f32
    %251 = vector.broadcast %cst_85 : f32 to vector<16x1xf32>
    %252 = arith.addf %250, %251 : vector<16x1xf32>
    %253 = math.rsqrt %252 : vector<16x1xf32>
    %254 = arith.mulf %210, %253 : vector<16x1xf32>
    %255 = vector.broadcast %254 : vector<16x1xf32> to vector<16x16xf32>
    %256 = arith.mulf %255, %4 : vector<16x16xf32>
    %257 = arith.mulf %215, %253 : vector<16x1xf32>
    %cst_86 = arith.constant 0.000000e+00 : f32
    %258 = vector.shape_cast %257 : vector<16x1xf32> to vector<16x1xf32>
    %259 = vector.broadcast %258 : vector<16x1xf32> to vector<16x16xf32>
    %260 = vector.broadcast %cst_86 : f32 to vector<16x16xf32>
    %261 = arith.select %2, %259, %260 : vector<16x16xi1>, vector<16x16xf32>
    %cst_87 = arith.constant dense<0.000000e+00> : vector<16xf32>
    %262 = vector.multi_reduction <add>, %261, %cst_87 [0] : vector<16x16xf32> to vector<16xf32>
    %263 = vector.shape_cast %262 : vector<16xf32> to vector<1x16xf32>
    %264 = vector.broadcast %263 : vector<1x16xf32> to vector<16x16xf32>
    %265 = arith.mulf %256, %264 : vector<16x16xf32>
    %266 = arith.mulf %253, %253 : vector<16x1xf32>
    %cst_88 = arith.constant 0.000000e+00 : f32
    %267 = vector.shape_cast %266 : vector<16x1xf32> to vector<16x1xf32>
    %268 = vector.broadcast %267 : vector<16x1xf32> to vector<16x16xf32>
    %269 = vector.broadcast %cst_88 : f32 to vector<16x16xf32>
    %270 = arith.select %2, %268, %269 : vector<16x16xi1>, vector<16x16xf32>
    %271 = arith.addf %265, %270 : vector<16x16xf32>
    %c1_89 = arith.constant 1 : index
    %c0_90 = arith.constant 0 : index
    %c0_91 = arith.constant 0 : index
    %272 = vector.load %arg12[%c1_89, %c0_90, %c0_91] : memref<3x32x32xbf16, #tpu.memory_space<vmem>>, vector<1x32x32xbf16>
    %273 = vector.shape_cast %272 : vector<1x32x32xbf16> to vector<32x32xbf16>
    %cst_92 = arith.constant dense<0.000000e+00> : vector<16x32xf32>
    %274 = tpu.matmul %187, %273, %cst_92 {dimension_numbers = #tpu.dot_dimension_numbers<[1], [0], [0], [1], [0, 0, 1, 1], [], []>} : vector<16x32xbf16>, vector<32x32xbf16>, vector<16x32xf32> -> vector<16x32xf32>
    %275 = arith.truncf %271 : vector<16x16xf32> to vector<16x16xbf16>
    %276 = arith.truncf %274 : vector<16x32xf32> to vector<16x32xbf16>
    %cst_93 = arith.constant dense<0.000000e+00> : vector<16x32xf32>
    %277 = tpu.matmul %275, %276, %cst_93 {dimension_numbers = #tpu.dot_dimension_numbers<[1], [0], [0], [1], [0, 0, 1, 1], [], []>} : vector<16x16xbf16>, vector<16x32xbf16>, vector<16x32xf32> -> vector<16x32xf32>
    %c1_94 = arith.constant 1 : index
    %c0_95 = arith.constant 0 : index
    %c0_96 = arith.constant 0 : index
    %278 = vector.load %arg13[%c1_94, %c0_95, %c0_96] : memref<3x1x32xf32, #tpu.memory_space<vmem>>, vector<1x1x32xf32>
    %279 = vector.shape_cast %278 : vector<1x1x32xf32> to vector<1x32xf32>
    %280 = vector.broadcast %279 : vector<1x32xf32> to vector<16x32xf32>
    %281 = arith.addf %277, %280 : vector<16x32xf32>
    %cst_97 = arith.constant 0.000000e+00 : f32
    %282 = vector.broadcast %cst_97 : f32 to vector<16x32xf32>
    %283 = arith.maximumf %281, %282 : vector<16x32xf32>
    %284 = arith.addf %186, %283 : vector<16x32xf32>
    %cst_98 = arith.constant dense<0.000000e+00> : vector<16xf32>
    %285 = vector.multi_reduction <add>, %284, %cst_98 [1] : vector<16x32xf32> to vector<16xf32>
    %286 = vector.shape_cast %285 : vector<16xf32> to vector<16x1xf32>
    %cst_99 = arith.constant 3.200000e+01 : f32
    %287 = vector.broadcast %cst_99 : f32 to vector<16x1xf32>
    %288 = arith.divf %286, %287 : vector<16x1xf32>
    %289 = vector.broadcast %288 : vector<16x1xf32> to vector<16x32xf32>
    %290 = arith.subf %284, %289 : vector<16x32xf32>
    %291 = arith.mulf %290, %290 : vector<16x32xf32>
    %cst_100 = arith.constant dense<0.000000e+00> : vector<16xf32>
    %292 = vector.multi_reduction <add>, %291, %cst_100 [1] : vector<16x32xf32> to vector<16xf32>
    %293 = vector.shape_cast %292 : vector<16xf32> to vector<16x1xf32>
    %cst_101 = arith.constant 3.200000e+01 : f32
    %294 = vector.broadcast %cst_101 : f32 to vector<16x1xf32>
    %295 = arith.divf %293, %294 : vector<16x1xf32>
    %296 = vector.broadcast %288 : vector<16x1xf32> to vector<16x32xf32>
    %297 = arith.subf %284, %296 : vector<16x32xf32>
    %cst_102 = arith.constant 9.99999974E-6 : f32
    %298 = vector.broadcast %cst_102 : f32 to vector<16x1xf32>
    %299 = arith.addf %295, %298 : vector<16x1xf32>
    %300 = math.rsqrt %299 : vector<16x1xf32>
    %301 = vector.broadcast %300 : vector<16x1xf32> to vector<16x32xf32>
    %302 = arith.mulf %297, %301 : vector<16x32xf32>
    %303 = vector.broadcast %27 : vector<1x32xf32> to vector<16x32xf32>
    %304 = arith.mulf %302, %303 : vector<16x32xf32>
    %305 = vector.broadcast %28 : vector<1x32xf32> to vector<16x32xf32>
    %306 = arith.addf %304, %305 : vector<16x32xf32>
    %307 = arith.truncf %306 : vector<16x32xf32> to vector<16x32xbf16>
    %cst_103 = arith.constant dense<0.000000e+00> : vector<16x32xf32>
    %308 = tpu.matmul %307, %39, %cst_103 {dimension_numbers = #tpu.dot_dimension_numbers<[1], [0], [0], [1], [0, 0, 1, 1], [], []>} : vector<16x32xbf16>, vector<32x32xbf16>, vector<16x32xf32> -> vector<16x32xf32>
    %309 = arith.truncf %308 : vector<16x32xf32> to vector<16x32xbf16>
    %cst_104 = arith.constant dense<0.000000e+00> : vector<16x32xf32>
    %310 = tpu.matmul %26, %309, %cst_104 {dimension_numbers = #tpu.dot_dimension_numbers<[1], [0], [0], [1], [0, 0, 1, 1], [], []>} : vector<16x16xbf16>, vector<16x32xbf16>, vector<16x32xf32> -> vector<16x32xf32>
    %311 = vector.broadcast %40 : vector<1x32xf32> to vector<16x32xf32>
    %312 = arith.addf %310, %311 : vector<16x32xf32>
    %cst_105 = arith.constant 0.000000e+00 : f32
    %313 = vector.broadcast %cst_105 : f32 to vector<16x32xf32>
    %314 = arith.maximumf %312, %313 : vector<16x32xf32>
    %315 = arith.truncf %314 : vector<16x32xf32> to vector<16x32xbf16>
    %cst_106 = arith.constant dense<0.000000e+00> : vector<16x4xf32>
    %316 = tpu.matmul %315, %41, %cst_106 {dimension_numbers = #tpu.dot_dimension_numbers<[1], [0], [0], [1], [0, 0, 1, 1], [], []>} : vector<16x32xbf16>, vector<32x4xbf16>, vector<16x4xf32> -> vector<16x4xf32>
    %317 = arith.truncf %316 : vector<16x4xf32> to vector<16x4xbf16>
    %cst_107 = arith.constant dense<0.000000e+00> : vector<16x4xf32>
    %318 = tpu.matmul %26, %317, %cst_107 {dimension_numbers = #tpu.dot_dimension_numbers<[1], [0], [0], [1], [0, 0, 1, 1], [], []>} : vector<16x16xbf16>, vector<16x4xbf16>, vector<16x4xf32> -> vector<16x4xf32>
    %319 = vector.broadcast %42 : vector<1x4xf32> to vector<16x4xf32>
    %320 = arith.addf %318, %319 : vector<16x4xf32>
    %c0_108 = arith.constant 0 : index
    %c2 = arith.constant 2 : index
    %c0_109 = arith.constant 0 : index
    %c0_110 = arith.constant 0 : index
    %321 = vector.load %arg3[%c0_108, %c2, %c0_109, %c0_110] : memref<1x3x16x4xf32, #tpu.memory_space<vmem>>, vector<1x1x16x4xf32>
    %322 = vector.shape_cast %321 : vector<1x1x16x4xf32> to vector<16x4xf32>
    %323 = arith.addf %320, %322 : vector<16x4xf32>
    %cst_111 = arith.constant 1.000000e+00 : f32
    %324 = vector.broadcast %cst_111 : f32 to vector<16x4xf32>
    %325 = arith.mulf %323, %324 : vector<16x4xf32>
    %326 = vector.extract_strided_slice %325 {offsets = [0, 0], sizes = [16, 1], strides = [1, 1]} : vector<16x4xf32> to vector<16x1xf32>
    %327 = vector.extract_strided_slice %325 {offsets = [0, 1], sizes = [16, 1], strides = [1, 1]} : vector<16x4xf32> to vector<16x1xf32>
    %328 = arith.cmpf oge, %326, %327 : vector<16x1xf32>
    %329 = arith.extui %328 : vector<16x1xi1> to vector<16x1xi32>
    %330 = arith.sitofp %329 : vector<16x1xi32> to vector<16x1xf32>
    %331 = vector.extract_strided_slice %325 {offsets = [0, 2], sizes = [16, 1], strides = [1, 1]} : vector<16x4xf32> to vector<16x1xf32>
    %332 = vector.extract_strided_slice %325 {offsets = [0, 3], sizes = [16, 1], strides = [1, 1]} : vector<16x4xf32> to vector<16x1xf32>
    %333 = arith.cmpf oge, %331, %332 : vector<16x1xf32>
    %334 = arith.extui %333 : vector<16x1xi1> to vector<16x1xi32>
    %335 = arith.sitofp %334 : vector<16x1xi32> to vector<16x1xf32>
    %336 = arith.truncf %4 : vector<16x16xf32> to vector<16x16xbf16>
    %337 = arith.truncf %335 : vector<16x1xf32> to vector<16x1xbf16>
    %cst_112 = arith.constant dense<0.000000e+00> : vector<16x1xf32>
    %338 = tpu.matmul %336, %337, %cst_112 {dimension_numbers = #tpu.dot_dimension_numbers<[1], [0], [0], [1], [0, 0, 1, 1], [], []>} : vector<16x16xbf16>, vector<16x1xbf16>, vector<16x1xf32> -> vector<16x1xf32>
    %339 = arith.mulf %330, %338 : vector<16x1xf32>
    %cst_113 = arith.constant 1.000000e+00 : f32
    %340 = vector.broadcast %cst_113 : f32 to vector<16x1xf32>
    %341 = arith.addf %339, %340 : vector<16x1xf32>
    %342 = math.rsqrt %341 : vector<16x1xf32>
    %343 = arith.mulf %330, %342 : vector<16x1xf32>
    %344 = vector.broadcast %343 : vector<16x1xf32> to vector<16x16xf32>
    %345 = arith.mulf %344, %4 : vector<16x16xf32>
    %346 = arith.mulf %335, %342 : vector<16x1xf32>
    %cst_114 = arith.constant 0.000000e+00 : f32
    %347 = vector.shape_cast %346 : vector<16x1xf32> to vector<16x1xf32>
    %348 = vector.broadcast %347 : vector<16x1xf32> to vector<16x16xf32>
    %349 = vector.broadcast %cst_114 : f32 to vector<16x16xf32>
    %350 = arith.select %2, %348, %349 : vector<16x16xi1>, vector<16x16xf32>
    %cst_115 = arith.constant dense<0.000000e+00> : vector<16xf32>
    %351 = vector.multi_reduction <add>, %350, %cst_115 [0] : vector<16x16xf32> to vector<16xf32>
    %352 = vector.shape_cast %351 : vector<16xf32> to vector<1x16xf32>
    %353 = vector.broadcast %352 : vector<1x16xf32> to vector<16x16xf32>
    %354 = arith.mulf %345, %353 : vector<16x16xf32>
    %355 = arith.mulf %342, %342 : vector<16x1xf32>
    %cst_116 = arith.constant 0.000000e+00 : f32
    %356 = vector.shape_cast %355 : vector<16x1xf32> to vector<16x1xf32>
    %357 = vector.broadcast %356 : vector<16x1xf32> to vector<16x16xf32>
    %358 = vector.broadcast %cst_116 : f32 to vector<16x16xf32>
    %359 = arith.select %2, %357, %358 : vector<16x16xi1>, vector<16x16xf32>
    %360 = arith.addf %354, %359 : vector<16x16xf32>
    %c2_117 = arith.constant 2 : index
    %c0_118 = arith.constant 0 : index
    %c0_119 = arith.constant 0 : index
    %361 = vector.load %arg12[%c2_117, %c0_118, %c0_119] : memref<3x32x32xbf16, #tpu.memory_space<vmem>>, vector<1x32x32xbf16>
    %362 = vector.shape_cast %361 : vector<1x32x32xbf16> to vector<32x32xbf16>
    %cst_120 = arith.constant dense<0.000000e+00> : vector<16x32xf32>
    %363 = tpu.matmul %307, %362, %cst_120 {dimension_numbers = #tpu.dot_dimension_numbers<[1], [0], [0], [1], [0, 0, 1, 1], [], []>} : vector<16x32xbf16>, vector<32x32xbf16>, vector<16x32xf32> -> vector<16x32xf32>
    %364 = arith.truncf %360 : vector<16x16xf32> to vector<16x16xbf16>
    %365 = arith.truncf %363 : vector<16x32xf32> to vector<16x32xbf16>
    %cst_121 = arith.constant dense<0.000000e+00> : vector<16x32xf32>
    %366 = tpu.matmul %364, %365, %cst_121 {dimension_numbers = #tpu.dot_dimension_numbers<[1], [0], [0], [1], [0, 0, 1, 1], [], []>} : vector<16x16xbf16>, vector<16x32xbf16>, vector<16x32xf32> -> vector<16x32xf32>
    %c2_122 = arith.constant 2 : index
    %c0_123 = arith.constant 0 : index
    %c0_124 = arith.constant 0 : index
    %367 = vector.load %arg13[%c2_122, %c0_123, %c0_124] : memref<3x1x32xf32, #tpu.memory_space<vmem>>, vector<1x1x32xf32>
    %368 = vector.shape_cast %367 : vector<1x1x32xf32> to vector<1x32xf32>
    %369 = vector.broadcast %368 : vector<1x32xf32> to vector<16x32xf32>
    %370 = arith.addf %366, %369 : vector<16x32xf32>
    %cst_125 = arith.constant 0.000000e+00 : f32
    %371 = vector.broadcast %cst_125 : f32 to vector<16x32xf32>
    %372 = arith.maximumf %370, %371 : vector<16x32xf32>
    %373 = arith.addf %306, %372 : vector<16x32xf32>
    %cst_126 = arith.constant dense<0.000000e+00> : vector<16xf32>
    %374 = vector.multi_reduction <add>, %373, %cst_126 [1] : vector<16x32xf32> to vector<16xf32>
    %375 = vector.shape_cast %374 : vector<16xf32> to vector<16x1xf32>
    %cst_127 = arith.constant 3.200000e+01 : f32
    %376 = vector.broadcast %cst_127 : f32 to vector<16x1xf32>
    %377 = arith.divf %375, %376 : vector<16x1xf32>
    %378 = vector.broadcast %377 : vector<16x1xf32> to vector<16x32xf32>
    %379 = arith.subf %373, %378 : vector<16x32xf32>
    %380 = arith.mulf %379, %379 : vector<16x32xf32>
    %cst_128 = arith.constant dense<0.000000e+00> : vector<16xf32>
    %381 = vector.multi_reduction <add>, %380, %cst_128 [1] : vector<16x32xf32> to vector<16xf32>
    %382 = vector.shape_cast %381 : vector<16xf32> to vector<16x1xf32>
    %cst_129 = arith.constant 3.200000e+01 : f32
    %383 = vector.broadcast %cst_129 : f32 to vector<16x1xf32>
    %384 = arith.divf %382, %383 : vector<16x1xf32>
    %385 = vector.broadcast %377 : vector<16x1xf32> to vector<16x32xf32>
    %386 = arith.subf %373, %385 : vector<16x32xf32>
    %cst_130 = arith.constant 9.99999974E-6 : f32
    %387 = vector.broadcast %cst_130 : f32 to vector<16x1xf32>
    %388 = arith.addf %384, %387 : vector<16x1xf32>
    %389 = math.rsqrt %388 : vector<16x1xf32>
    %390 = vector.broadcast %389 : vector<16x1xf32> to vector<16x32xf32>
    %391 = arith.mulf %386, %390 : vector<16x32xf32>
    %392 = vector.broadcast %27 : vector<1x32xf32> to vector<16x32xf32>
    %393 = arith.mulf %391, %392 : vector<16x32xf32>
    %394 = vector.broadcast %28 : vector<1x32xf32> to vector<16x32xf32>
    %395 = arith.addf %393, %394 : vector<16x32xf32>
    %cst_131 = arith.constant dense<0.000000e+00> : vector<32xf32>
    %396 = vector.multi_reduction <add>, %395, %cst_131 [0] : vector<16x32xf32> to vector<32xf32>
    %397 = vector.shape_cast %396 : vector<32xf32> to vector<1x32xf32>
    %cst_132 = arith.constant 1.600000e+01 : f32
    %398 = vector.broadcast %cst_132 : f32 to vector<1x32xf32>
    %399 = arith.divf %397, %398 : vector<1x32xf32>
    %c0_133 = arith.constant 0 : index
    %c0_134 = arith.constant 0 : index
    %400 = vector.load %arg14[%c0_133, %c0_134] : memref<32x4xbf16, #tpu.memory_space<vmem>>, vector<32x4xbf16>
    %401 = arith.truncf %399 : vector<1x32xf32> to vector<1x32xbf16>
    %cst_135 = arith.constant dense<0.000000e+00> : vector<1x4xf32>
    %402 = tpu.matmul %401, %400, %cst_135 {dimension_numbers = #tpu.dot_dimension_numbers<[1], [0], [0], [1], [0, 0, 1, 1], [], []>} : vector<1x32xbf16>, vector<32x4xbf16>, vector<1x4xf32> -> vector<1x4xf32>
    %c0_136 = arith.constant 0 : index
    %c0_137 = arith.constant 0 : index
    %403 = vector.load %arg15[%c0_136, %c0_137] : memref<1x4xf32, #tpu.memory_space<vmem>>, vector<1x4xf32>
    %404 = arith.addf %402, %403 : vector<1x4xf32>
    %c0_138 = arith.constant 0 : index
    %c0_139 = arith.constant 0 : index
    %c0_140 = arith.constant 0 : index
    %405 = vector.load %arg16[%c0_138, %c0_139, %c0_140] : memref<1x1x4xf32, #tpu.memory_space<vmem>>, vector<1x1x4xf32>
    %406 = vector.shape_cast %405 : vector<1x1x4xf32> to vector<1x4xf32>
    %407 = vector.shape_cast %404 : vector<1x4xf32> to vector<1x1x4xf32>
    tpu.vector_store %arg16[%c0_138, %c0_139, %c0_140], %407 {strides = array<i32>} : memref<1x1x4xf32, #tpu.memory_space<vmem>>, vector<1x1x4xf32>,
    %c0_141 = arith.constant 0 : index
    %c0_142 = arith.constant 0 : index
    %c0_143 = arith.constant 0 : index
    %408 = vector.load %arg17[%c0_141, %c0_142, %c0_143] : memref<1x16x12xf32, #tpu.memory_space<vmem>>, vector<1x16x12xf32>
    %409 = vector.shape_cast %408 : vector<1x16x12xf32> to vector<16x12xf32>
    %410 = vector.shape_cast %246 : vector<16x12xf32> to vector<1x16x12xf32>
    tpu.vector_store %arg17[%c0_141, %c0_142, %c0_143], %410 {strides = array<i32>} : memref<1x16x12xf32, #tpu.memory_space<vmem>>, vector<1x16x12xf32>,
    return
  }
  func.func @transform_0(%arg0: i32) -> (i32, i32, i32) {
    %c0_i32 = arith.constant 0 : i32
    %c0_i32_0 = arith.constant 0 : i32
    %c0_i32_1 = arith.constant 0 : i32
    return %arg0, %c0_i32, %c0_i32_0 : i32, i32, i32
  }
  func.func @transform_1(%arg0: i32) -> (i32, i32, i32) {
    %c0_i32 = arith.constant 0 : i32
    %c0_i32_0 = arith.constant 0 : i32
    %c0_i32_1 = arith.constant 0 : i32
    return %arg0, %c0_i32, %c0_i32_0 : i32, i32, i32
  }
  func.func @transform_2(%arg0: i32) -> (i32, i32, i32, i32) {
    %c0_i32 = arith.constant 0 : i32
    %c0_i32_0 = arith.constant 0 : i32
    %c0_i32_1 = arith.constant 0 : i32
    %c0_i32_2 = arith.constant 0 : i32
    return %arg0, %c0_i32, %c0_i32_0, %c0_i32_1 : i32, i32, i32, i32
  }
  func.func @transform_3(%arg0: i32) -> (i32, i32) {
    %c0_i32 = arith.constant 0 : i32
    %c0_i32_0 = arith.constant 0 : i32
    %c0_i32_1 = arith.constant 0 : i32
    return %c0_i32, %c0_i32_0 : i32, i32
  }
  func.func @transform_4(%arg0: i32) -> (i32, i32) {
    %c0_i32 = arith.constant 0 : i32
    %c0_i32_0 = arith.constant 0 : i32
    %c0_i32_1 = arith.constant 0 : i32
    return %c0_i32, %c0_i32_0 : i32, i32
  }
  func.func @transform_5(%arg0: i32) -> (i32, i32) {
    %c0_i32 = arith.constant 0 : i32
    %c0_i32_0 = arith.constant 0 : i32
    %c0_i32_1 = arith.constant 0 : i32
    return %c0_i32, %c0_i32_0 : i32, i32
  }
  func.func @transform_6(%arg0: i32) -> (i32, i32) {
    %c0_i32 = arith.constant 0 : i32
    %c0_i32_0 = arith.constant 0 : i32
    %c0_i32_1 = arith.constant 0 : i32
    return %c0_i32, %c0_i32_0 : i32, i32
  }
  func.func @transform_7(%arg0: i32) -> (i32, i32) {
    %c0_i32 = arith.constant 0 : i32
    %c0_i32_0 = arith.constant 0 : i32
    %c0_i32_1 = arith.constant 0 : i32
    return %c0_i32, %c0_i32_0 : i32, i32
  }
  func.func @transform_8(%arg0: i32) -> (i32, i32) {
    %c0_i32 = arith.constant 0 : i32
    %c0_i32_0 = arith.constant 0 : i32
    %c0_i32_1 = arith.constant 0 : i32
    return %c0_i32, %c0_i32_0 : i32, i32
  }
  func.func @transform_9(%arg0: i32) -> (i32, i32) {
    %c0_i32 = arith.constant 0 : i32
    %c0_i32_0 = arith.constant 0 : i32
    %c0_i32_1 = arith.constant 0 : i32
    return %c0_i32, %c0_i32_0 : i32, i32
  }
  func.func @transform_10(%arg0: i32) -> (i32, i32) {
    %c0_i32 = arith.constant 0 : i32
    %c0_i32_0 = arith.constant 0 : i32
    %c0_i32_1 = arith.constant 0 : i32
    return %c0_i32, %c0_i32_0 : i32, i32
  }
  func.func @transform_11(%arg0: i32) -> (i32, i32, i32) {
    %c0_i32 = arith.constant 0 : i32
    %c0_i32_0 = arith.constant 0 : i32
    %c0_i32_1 = arith.constant 0 : i32
    %c0_i32_2 = arith.constant 0 : i32
    return %c0_i32, %c0_i32_0, %c0_i32_1 : i32, i32, i32
  }
  func.func @transform_12(%arg0: i32) -> (i32, i32, i32) {
    %c0_i32 = arith.constant 0 : i32
    %c0_i32_0 = arith.constant 0 : i32
    %c0_i32_1 = arith.constant 0 : i32
    %c0_i32_2 = arith.constant 0 : i32
    return %c0_i32, %c0_i32_0, %c0_i32_1 : i32, i32, i32
  }
  func.func @transform_13(%arg0: i32) -> (i32, i32) {
    %c0_i32 = arith.constant 0 : i32
    %c0_i32_0 = arith.constant 0 : i32
    %c0_i32_1 = arith.constant 0 : i32
    return %c0_i32, %c0_i32_0 : i32, i32
  }
  func.func @transform_14(%arg0: i32) -> (i32, i32) {
    %c0_i32 = arith.constant 0 : i32
    %c0_i32_0 = arith.constant 0 : i32
    %c0_i32_1 = arith.constant 0 : i32
    return %c0_i32, %c0_i32_0 : i32, i32
  }
  func.func @transform_15(%arg0: i32) -> (i32, i32, i32) {
    %c0_i32 = arith.constant 0 : i32
    %c0_i32_0 = arith.constant 0 : i32
    %c0_i32_1 = arith.constant 0 : i32
    return %arg0, %c0_i32, %c0_i32_0 : i32, i32, i32
  }
  func.func @transform_16(%arg0: i32) -> (i32, i32, i32) {
    %c0_i32 = arith.constant 0 : i32
    %c0_i32_0 = arith.constant 0 : i32
    %c0_i32_1 = arith.constant 0 : i32
    return %arg0, %c0_i32, %c0_i32_0 : i32, i32, i32
  }
}

</mosaic_0001>

<bundles_post_ra>
// kernel: cognn_forward_batched.1
= control target key start
LH: loop header
LB: loop body
LE: loop exit
PB: predicated region body
PF: predicated region fallthrough
CT: control target
= control target key end

     0   :  { %s3647_s0 = inlined_call_operand.vmem [shape: f32[2,16,8], index: 0, kind: input, shape index: {}]   ;;  %s3648_s1 = inlined_call_operand.vmem [shape: f32[2,16,16], index: 1, kind: input, shape index: {}]   ;;  %s3649_s2 = inlined_call_operand.vmem [shape: f32[2,3,16,4], index: 2, kind: input, shape index: {}]   ;;  %s3650_s3 = inlined_call_operand.vmem [shape: bf16[8,32], index: 3, kind: input, shape index: {}]   ;;  %s3651_s4 = inlined_call_operand.vmem [shape: f32[1,32], index: 4, kind: input, shape index: {}]   ;;  %s3652_s5 = inlined_call_operand.vmem [shape: f32[1,32], index: 5, kind: input, shape index: {}]   ;;  %s3653_s6 = inlined_call_operand.vmem [shape: f32[1,32], index: 6, kind: input, shape index: {}]   ;;  %s3654_s7 = inlined_call_operand.vmem [shape: bf16[32,32], index: 7, kind: input, shape index: {}]   ;;  %s3655_s8 = inlined_call_operand.vmem [shape: f32[1,32], index: 8, kind: input, shape index: {}]   ;;  %s3656_s9 = inlined_call_operand.vmem [shape: bf16[32,4], index: 9, kind: input, shape index: {}]   ;;  %s3657_s10 = inlined_call_operand.vmem [shape: f32[1,4], index: 10, kind: input, shape index: {}]   ;;  %s3658_s11 = inlined_call_operand.vmem [shape: bf16[3,32,32], index: 11, kind: input, shape index: {}]   ;;  %s3659_s12 = inlined_call_operand.vmem [shape: f32[3,1,32], index: 12, kind: input, shape index: {}]   ;;  %s3660_s13 = inlined_call_operand.vmem [shape: bf16[32,4], index: 13, kind: input, shape index: {}]   ;;  %s3661_s14 = inlined_call_operand.vmem [shape: f32[1,4], index: 14, kind: input, shape index: {}]   ;;  %s3662_s15 = inlined_call_operand.hbm [shape: f32[2,1,4], index: 15, kind: output, shape index: {0}]   ;;  %s3663_s16 = inlined_call_operand.vmem [shape: f32[2,16,12], index: 16, kind: output, shape index: {1}]  }
   0x1   :  { %3667 = sst [smem:[#allocation6_spill]] %s3647_s0 }
   0x2   :  { %3668 = sst [smem:[#allocation7_spill]] %s3648_s1 }
   0x3   :  { %3669 = sst [smem:[#allocation8_spill]] %s3649_s2 }
   0x4   :  { %3670 = sst [smem:[#allocation9_spill]] %s3650_s3 }
   0x5   :  { %3671 = sst [smem:[#allocation10_spill]] %s3651_s4 }
   0x6   :  { %22 = vsyncpa [#allocation3], 0 }
   0x7   :  { %24 = vsyncpa [#allocation3 + $0x1], 0  ;;  %s3036_s21 = smov 0   ;;  %s3038_s22 = smov 0  }
   0x8   :  { %s3040_s23 = smov 0   ;;  %s3042_s24 = smov 0  }
   0x9 LB: > { %s3057_s25 = sadd.s32 4294967295, %s2941_s24   ;;  %s2453_s26 = sadd.s32 4294967294, %s2941_s24   ;;  %s2941_s24 = sphi %s3042_s24, %s3698_s24   ;;  %s2937_s23 = sphi %s3040_s23, %s3697_s23   ;;  %s2933_s22 = sphi %s3038_s22, %s3696_s22   ;;  %s2929_s21 = sphi %s3036_s21, %s3695_s21  }
   0xa   : > { %s3061_s27 = sadd.s32 1, %s2941_s24   ;;  %s367_s28 = sadd.s32 1, %s2937_s23 }
   0xb   : > { %s364_s29 = ssub.s32 %s2941_s24, %s3061_s27  ;;  %p377_p0 = scmp.ne.s32.totalorder %s2937_s23, %s2933_s22 }
   0xc   : > { %p365_p1 = scmp.eq.s32.totalorder %s364_s29, 0  ;;  %p378_p2 = scmp.eq.s32.totalorder %s3057_s25, 1 }
   0xd   : > { %p383_p3 = scmp.ne.s32.totalorder %s2933_s22, %s2929_s21  ;;  %p384_p4 = scmp.eq.s32.totalorder %s2453_s26, 1 }
   0xe   : > { %s3072_s30 = scalar_select %p365_p1, %s2937_s23, %s367_s28  }
   0xf   : > { %p3074_p5 = por %p378_p2, %p377_p0  ;;  %p3078_p6 = por %p384_p4, %p383_p3 }
  0x10   : > { %3672 = sst [smem:[#allocation5_spill]] %s3072_s30  ;;  %p2456_p7 = scmp.ge.s32.totalorder %s2941_s24, 1 }
  0x11   : > { %p488_p8 = scmp.lt.s32.totalorder %s2941_s24, 3 }
  0x13   : > { %p489_p9 = pnand %p2456_p7, %p488_p8 }
  0x14   : > { %s3675_s3 = sld [smem:[#allocation9_spill]] (!%p489_p9)  ;;  %p552_p10 = scmp.lt.s32.totalorder (!%p489_p9), %s3057_s25, 1 }
  0x15   : > { %492 = sbr.rel (%p489_p9) target bundleno = 6878 (0x1ade), region = 80  ;;  %s3676_s18 = sld [smem:[#allocation6_spill]] (!%p489_p9) }
  0x16   : > { %s3677_s4 = sld [smem:[#allocation10_spill]] (!%p489_p9)  ;;  %s3664_s29 = smov (!%p489_p9), 2  }
  0x17   : > { %s3678_s1 = sld [smem:[#allocation7_spill]] (!%p489_p9) }
  0x18   : > { %s3683_s2 = sld [smem:[#allocation8_spill]] (!%p489_p9) }
  0x1a   : > { %v619_v0 = vld [vmem:[%s3675_s3] sm:$0xf]  ;;  %vm632_vm0 = vcmask 1043456   ;;  %v2943_v1 = vmov 0.0   ;;  %vm2944_vm1 = vmmov 0   ;;  %s3092_s20 = scalar_select %p552_p10, %s3057_s25, 1  ;;  %v573_v54 = vlaneseq }
  0x1b   : > { %2591 = vmatprep.subr.bf16.mxu0 %v2943_v1  ;;  %v634_v2 = vsel %vm632_vm0, %v619_v0, 0  ;;  %2593 = vmatprep.mubr.msk.bf16.mxu0 %vm2944_vm1, %v2943_v1  ;;  %vm628_vm2 = vcmask 64512   ;;  %vm689_vm3 = vcmask 261120   ;;  %v3117_v27 = vld [vmem:[%s3654_s7 + $0x8] sm:$0xff]   ;;  %v3123_v28 = vld [vmem:[%s3654_s7] sm:$0xff]   ;;  %vm582_vm4 = vcmask 130048  }
  0x1c   : > { %2592 = vmatpush3.bf16.msra.mxu0 %v634_v2  ;;  %2597 = vmatprep.subr.bf16.mxu1 %v2943_v1  ;;  %s3099_s26 = sshll.u32 %s3092_s20, 4  ;;  %v2464_v6 = vld [vmem:[%s3677_s4] ss:$0 sm:$0xff]  ;;  %v574_v55 = vshrl.u32 %v573_v54, 7  ;;  %v3170_v57 = vand.u32 127, %v573_v54  ;;  %s2749_s28 = smul.u32 48, %s3092_s20 }
  0x1d   : > { %2601 = vmatprep.mubr.msk.bf16.mxu1 %vm2944_vm1, %v2943_v1  ;;  %2605 = vmatprep.subr.bf16.mxu0 %v2943_v1  ;;  %s556_s19 = scalar_lea.vmem %s3676_s18, %s3099_s26  ;;  %s3132_s4 = scalar_lea.vmem %s3678_s1, %s3099_s26  ;;  %v3147_v41 = vld [vmem:[%s3652_s5] ss:$0 sm:$0xff] }
  0x1e   : > { %v617_v3 = vld [vmem:[%s556_s19] sm:$0xff]  ;;  %v618_v4 = vld [vmem:[%s556_s19 + $0x8] sm:$0xff]  ;;  %2598 = vmatpush3.bf16.msra.mxu1 %v3117_v27  ;;  %v575_v56 = vadd.s32 8, %v574_v55  ;;  %vm3173_vm5 = vcmp.eq.s32.totalorder %v574_v55, %v3170_v57  ;;  %s3250_s19 = scalar_lea.vmem %s3683_s2, %s2749_s28  ;;  %s2945_s20 = smov 127  }
  0x1f   : > { %v620_v5 = vpack.c.bf16 %v618_v4, %v617_v3  ;;  %2599 = vmatprep.subr.bf16.mxu1 %v2943_v1  ;;  %v3135_v29 = vld [vmem:[%s3132_s4] sm:$0xff]  ;;  %v3138_v30 = vld [vmem:[%s3132_s4 + $0x8] sm:$0xff]  ;;  %s3666_s28 = smov 126   ;;  %s543_s3 = sand.u32 1, %s2933_s22  }
  0x20   : > { %v583_v31 = vsel %vm582_vm4, %v3135_v29, 0.0  ;;  %v586_v32 = vsel %vm582_vm4, %v3138_v30, 0.0  ;;  %v3153_v45 = vld [vmem:[%s3653_s6] ss:$0 sm:$0xff]  ;;  %vm3178_vm6 = vcmp.eq.s32.totalorder %v575_v56, %v3170_v57  ;;  %s2329_s30 = scalar_lea.sflag [#allocation3], %s543_s3  ;;  %s2950_s18 = smov [#allocation2]  }
  0x21   : > { %2594 = vmatmul.mubr.msk.bf16.vlgmr.msra.gmra.mxu0 %vm628_vm2, %v620_v5  ;;  %v948_v55 = vld [vmem:[%s3250_s19] sm:$0xff]  ;;  %s2885_s1 = sshll.u32 %s2950_s18, 4  ;;  %s2886_s1 = int_to_ptr.vmem [resolvable:$false] %s2885_s1 }
  0x22   : > { %2607 = vmatprep.mubr.msk.bf16.mxu0 %vm2944_vm1, %v2943_v1  ;;  %2600 = vmatpush3.bf16.msra.mxu1 %v3123_v28 }
  0x23   : > { %2611 = vmatprep.subr.bf16.mxu1 %v2943_v1 }
  0xe1   : > { %v670_v7 = vpop.f32.mrf.mxu0 }
  0xe2   : > { %v671_v8 = vadd.f32 %v2464_v6, %v670_v7 }
  0xe3   : > { %v2595_v9 = vpop.f32.mrf.mxu0 }
  0xe4   : > { %v677_v10 = vmax.f32 %v671_v8, 0.0 }
  0xe5   : > { %v673_v11 = vpop.f32.mrf.mxu0 }
  0xe6   : > { %v674_v12 = vadd.f32 %v2464_v6, %v673_v11  ;;  %v690_v13 = vsel %vm689_vm3, %v677_v10, 0.0 }
  0xe7   : > { %691 = vadd.xlane.f32.xlu0 %v690_v13  ;;  %v2596_v14 = vpop.f32.mrf.mxu0 }
  0xe8   : > { %v678_v15 = vmax.f32 %v674_v12, 0.0 }
  0xea   : > { %v693_v16 = vsel %vm689_vm3, %v678_v15, 0.0 }
  0xeb   : > { %694 = vadd.xlane.f32.xlu0 %v693_v16 }
  0xef   : > { %584 = vadd.xlane.f32.xlu0 %v583_v31  ;;  %v3211_v31 = vld [vmem:[%s3656_s9] sm:$0xff]  }
 0x170   : > { %v692_v17 = vpop.xlane.xlu0 %691 }
 0x171   : > { %v697_v18 = vmul.f32 0.03125, %v692_v17 }
 0x173   : > { %v699_v19 = vsub.f32 %v677_v10, %v697_v18 }
 0x174   : > { %v695_v20 = vpop.xlane.xlu0 %694 }
 0x175   : > { %v698_v21 = vmul.f32 0.03125, %v695_v20  ;;  %v701_v22 = vmul.f32 %v699_v19, %v699_v19 }
 0x177   : > { %v700_v23 = vsub.f32 %v678_v15, %v698_v21  ;;  %v703_v24 = vsel %vm689_vm3, %v701_v22, 0.0 }
 0x178   : > { %704 = vadd.xlane.f32.xlu1 %v703_v24  ;;  %v585_v51 = vpop.xlane.xlu0 %584 }
 0x179   : > { %v702_v25 = vmul.f32 %v700_v23, %v700_v23  ;;  %v589_v53 = vadd.f32 1.0, %v585_v51 }
 0x17b   : > { %v706_v26 = vsel %vm689_vm3, %v702_v25, 0.0 }
 0x17c   : > { %707 = vadd.xlane.f32.xlu1 %v706_v26  ;;  %v3204_v26 = vld [vmem:[%s3656_s9 + $0x8] sm:$0xff]  }
 0x180   : > { %587 = vadd.xlane.f32.xlu1 %v586_v32  ;;  %v3218_v32 = vld [vmem:[%s3655_s8] ss:$0 sm:$0xff] }
 0x201   : > { %v705_v33 = vpop.xlane.xlu1 %704 }
 0x202   : > { %v709_v34 = vmul.f32 0.03125, %v705_v33 }
 0x204   : > { %v711_v35 = vadd.f32 1e-05, %v709_v34 }
 0x205   : > { %v708_v36 = vpop.xlane.xlu1 %707 }
 0x206   : > { %2845 = vrsqrt.f32 %v711_v35  ;;  %v710_v37 = vmul.f32 0.03125, %v708_v36 }
 0x208   : > { %v712_v38 = vadd.f32 1e-05, %v710_v37 }
 0x209   : > { %v588_v50 = vpop.xlane.xlu1 %587 }
 0x20a   : > { %2847 = vrsqrt.f32 %v712_v38  ;;  %v590_v52 = vadd.f32 1.0, %v588_v50 }
 0x20c   : > { %2849 = vrsqrt.f32 %v590_v52  ;;  %v2837_v52 = vld [vmem:[%s3658_s11 + $0x8] sm:$0xff]  }
 0x20d   : > { %2851 = vrsqrt.f32 %v589_v53  ;;  %v2838_v53 = vld [vmem:[%s3658_s11] sm:$0xff]  }
 0x213   : > { %v2846_v39 = vpop.eup %2845 }
 0x214   : > { %v715_v40 = vmul.f32 %v2846_v39, %v699_v19 }
 0x216   : > { %v723_v44 = vmul.f32 %v3147_v41, %v715_v40 }
 0x217   : > { %v2848_v42 = vpop.eup %2847 }
 0x218   : > { %v716_v43 = vmul.f32 %v2848_v42, %v700_v23  ;;  %v3157_v47 = vadd.f32 %v3153_v45, %v723_v44 }
 0x219   : > { %v2850_v58 = vpop.eup %2849 }
 0x21a   : > { %v724_v46 = vmul.f32 %v3147_v41, %v716_v43  ;;  %v2852_v59 = vpop.eup %2851  ;;  %v596_v63 = vsel %vm3178_vm6, %v2850_v58, 0.0  ;;  %v594_v10 = vmul.f32 %v2850_v58, %v3138_v30  ;;  %v609_v13 = vmul.f32 %v2850_v58, %v2850_v58 }
 0x21b   : > { %v595_v62 = vsel %vm3173_vm5, %v2852_v59, 0.0  ;;  %v598_v2 = vsel %vm582_vm4, %v596_v63, 0.0  ;;  %v593_v9 = vmul.f32 %v2852_v59, %v3135_v29  ;;  %v608_v12 = vmul.f32 %v2852_v59, %v2852_v59  ;;  %v949_v63 = vld [vmem:[%s3250_s19 + $0x8] sm:$0xff] }
 0x21c   : > { %v3160_v48 = vadd.f32 %v3153_v45, %v724_v46  ;;  %v597_v0 = vsel %vm582_vm4, %v595_v62, 0.0  ;;  %v611_v18 = vsel %vm3178_vm6, %v609_v13, 0.0 }
 0x21d   : > { %v599_v3 = vadd.f32 %v598_v2, %v597_v0  ;;  %v610_v17 = vsel %vm3173_vm5, %v608_v12, 0.0 }
 0x21e   : > { %v3164_v49 = vpack.c.bf16 %v3160_v48, %v3157_v47 }
 0x21f   : > { %v600_v4 = vrot.slane %v599_v3, 4 }
 0x220   : > { %2602 = vmatmul.mubr.msk.bf16.vlgmr.msra.gmra.mxu1 %vm689_vm3, %v3164_v49 }
 0x221   : > { %2615 = vmatprep.mubr.msk.bf16.mxu1 %vm2944_vm1, %v2943_v1  ;;  %v601_v5 = vadd.f32 %v600_v4, %v599_v3  ;;  %2612 = vmatpush3.bf16.msra.mxu1 %v3204_v26 }
 0x222   : > { %2613 = vmatprep.subr.bf16.mxu1 %v2943_v1 }
 0x223   : > { %v602_v6 = vrot.slane %v601_v5, 2 }
 0x225   : > { %v603_v7 = vadd.f32 %v602_v6, %v601_v5  ;;  %2614 = vmatpush3.bf16.msra.mxu1 %v3211_v31 }
 0x226   : > { %2625 = vmatprep.subr.bf16.mxu1 %v2943_v1 }
 0x227   : > { %v604_v8 = vrot.slane %v603_v7, 1 }
 0x229   : > { %v605_v11 = vadd.f32 %v604_v8, %v603_v7 }
 0x22b   : > { %v606_v15 = vmul.f32 %v605_v11, %v593_v9  ;;  %v607_v16 = vmul.f32 %v605_v11, %v594_v10 }
 0x22d   : > { %v612_v21 = vadd.f32 %v610_v17, %v606_v15  ;;  %v613_v22 = vadd.f32 %v611_v18, %v607_v16  ;;  %v3274_v15 = vpack.c.bf16 %v3138_v30, %v3135_v29 }
 0x22f   : > { %v3194_v25 = vpack.c.bf16 %v613_v22, %v612_v21 }
 0x2e0   : > { %v783_v14 = vpop.f32.mrf.mxu1 }
 0x2e2   : > { %v2603_v19 = vpop.f32.mrf.mxu1 }
 0x2e4   : > { %v786_v20 = vpop.f32.mrf.mxu1 }
 0x2e5   : > { %v790_v23 = vpack.c.bf16 %v786_v20, %v783_v14 }
 0x2e6   : > { %v2604_v24 = vpop.f32.mrf.mxu1 }
 0x2e7   : > { %2606 = vmatpush3.bf16.msra.mxu0 %v790_v23  ;;  %v2947_v24 = vmov 2  }
 0x2e8   : > { %2619 = vmatprep.subr.bf16.mxu0 %v2943_v1  ;;  %2796 = vset.pattern.permute.xlu1 %v2947_v24 }
 0x2e9   : > { %2797 = vset.pattern.permute.xlu0 %v2947_v24 }
 0x2ea   : > { %2608 = vmatmul.mubr.msk.bf16.vlgmr.msra.gmra.mxu0 %vm582_vm4, %v3194_v25 }
 0x2eb   : > { %2621 = vmatprep.mubr.msk.bf16.mxu0 %vm2944_vm1, %v2943_v1 }
 0x3aa   : > { %v834_v33 = vpop.f32.mrf.mxu0 }
 0x3ab   : > { %v835_v35 = vadd.f32 %v3218_v32, %v834_v33 }
 0x3ac   : > { %v2609_v34 = vpop.f32.mrf.mxu0 }
 0x3ad   : > { %v841_v39 = vmax.f32 %v835_v35, 0.0 }
 0x3ae   : > { %v837_v36 = vpop.f32.mrf.mxu0 }
 0x3af   : > { %v838_v37 = vadd.f32 %v3218_v32, %v837_v36 }
 0x3b0   : > { %v2610_v38 = vpop.f32.mrf.mxu0 }
 0x3b1   : > { %v842_v40 = vmax.f32 %v838_v37, 0.0 }
 0x3b3   : > { %v843_v42 = vpack.c.bf16 %v842_v40, %v841_v39  ;;  %v2949_v40 = vmov 0  }
 0x3b5   : > { %2616 = vmatmul.mubr.msk.bf16.vlgmr.msra.gmra.mxu1 %vm689_vm3, %v843_v42 }
 0x3b6   : > { %2627 = vmatprep.mubr.msk.bf16.mxu1 %vm2944_vm1, %v2943_v1 }
 0x475   : > { %v893_v43 = vpop.f32.mrf.mxu1 }
 0x477   : > { %v2617_v44 = vpop.f32.mrf.mxu1 }
 0x479   : > { %v896_v46 = vpop.f32.mrf.mxu1 }
 0x47a   : > { %v900_v50 = vpack.c.bf16 %v896_v46, %v893_v43 }
 0x47b   : > { %v2618_v51 = vpop.f32.mrf.mxu1 }
 0x47c   : > { %2620 = vmatpush3.bf16.msra.mxu0 %v900_v50 }
 0x47d   : > { %2631 = vmatprep.subr.bf16.mxu0 %v2943_v1 }
 0x47f   : > { %2622 = vmatmul.mubr.msk.bf16.vlgmr.msra.gmra.mxu0 %vm582_vm4, %v3194_v25 }
 0x480   : > { %2632 = vmatpush3.bf16.msra.mxu0 %v2837_v52  ;;  %2635 = vmatprep.mubr.msk.bf16.mxu0 %vm2944_vm1, %v2943_v1 }
 0x481   : > { %2633 = vmatprep.subr.bf16.mxu0 %v2943_v1 }
 0x484   : > { %2634 = vmatpush3.bf16.msra.mxu0 %v2838_v53 }
 0x485   : > { %2645 = vmatprep.subr.bf16.mxu0 %v2943_v1 }
 0x487   : > { %2636 = vmatmul.mubr.msk.bf16.vlgmr.msra.gmra.mxu0 %vm689_vm3, %v3164_v49  ;;  %v3255_v49 = vld [vmem:[%s3657_s10] ss:$0 sm:$0xff] }
 0x488   : > { %2646 = vmatpush3.bf16.msra.mxu0 %v3117_v27  ;;  %2649 = vmatprep.mubr.msk.bf16.mxu0 %vm2944_vm1, %v2943_v1 }
 0x489   : > { %2647 = vmatprep.subr.bf16.mxu0 %v2943_v1 }
 0x48c   : > { %2648 = vmatpush3.bf16.msra.mxu0 %v3123_v28 }
 0x48d   : > { %2659 = vmatprep.subr.bf16.mxu0 %v2943_v1 }
 0x53f   : > { %v941_v54 = vpop.f32.mrf.mxu0 }
 0x540   : > { %v942_v56 = vadd.f32 %v3255_v49, %v941_v54 }
 0x541   : > { %v2623_v58 = vpop.f32.mrf.mxu0 }
 0x542   : > { %v950_v59 = vadd.f32 %v948_v55, %v942_v56 }
 0x543   : > { %v944_v62 = vpop.f32.mrf.mxu0 }
 0x544   : > { %v945_v0 = vadd.f32 %v3255_v49, %v944_v62  ;;  %954 = vrot.lane.b32.xlu0 %v950_v59, %s2945_s20 }
 0x545   : > { %v2624_v2 = vpop.f32.mrf.mxu0 }
 0x546   : > { %v951_v3 = vadd.f32 %v949_v63, %v945_v0 }
 0x547   : > { %v1190_v4 = vpop.f32.mrf.mxu0 }
 0x548   : > { %956 = vrot.lane.b32.xlu1 %v951_v3, %s2945_s20 }
 0x549   : > { %v2637_v5 = vpop.f32.mrf.mxu0 }
 0x54b   : > { %v1193_v6 = vpop.f32.mrf.mxu0 }
 0x54c   : > { %v1198_v7 = vpack.c.bf16 %v1193_v6, %v1190_v4 }
 0x54d   : > { %v2638_v8 = vpop.f32.mrf.mxu0 }
 0x5b6   : > { %v955_v9 = vpop.permute.xlu0 %954 }
 0x5b7   : > { %vm960_vm7 = vcmp.ge.f32.partialorder %v950_v59, %v955_v9 }
 0x5b8   : > { %v3264_v11 = vsel %vm960_vm7, 1.0, %v2943_v1 }
 0x5ba   : > { %v957_v10 = vpop.permute.xlu1 %956 }
 0x5bb   : > { %vm961_vm8 = vcmp.ge.f32.partialorder %v951_v3, %v957_v10 }
 0x5bc   : > { %v3267_v12 = vsel %vm961_vm8, 1.0, %v2943_v1  ;;  %vm2325_vm8 = vcmask 97280  }
 0x5bd   : > { %v1022_v13 = vpack.c.bf16 %v3267_v12, %v3264_v11 }
 0x5bf   : > { %1024 = vrot.lane.b32.xlu1 %v1022_v13, %s3666_s28 }
 0x631   : > { %v1025_v14 = vpop.permute.xlu1 %1024 }
 0x632   : > { %2626 = vmatpush3.bf16.msra.mxu1 %v1025_v14 }
 0x633   : > { %2639 = vmatprep.subr.bf16.mxu1 %v2943_v1 }
 0x635   : > { %2628 = vmatmul.mubr.msk.bf16.vlgmr.msra.gmra.mxu1 %vm582_vm4, %v3274_v15 }
 0x636   : > { %2640 = vmatpush3.bf16.msra.mxu1 %v1198_v7  ;;  %2641 = vmatprep.mubr.msk.bf16.mxu1 %vm2944_vm1, %v2943_v1 }
 0x637   : > { %2653 = vmatprep.subr.bf16.mxu1 %v2943_v1 }
 0x6f5   : > { %v1064_v16 = vpop.f32.mrf.mxu1 }
 0x6f6   : > { %v1071_v17 = vmul.f32 %v3264_v11, %v1064_v16 }
 0x6f7   : > { %v2629_v18 = vpop.f32.mrf.mxu1 }
 0x6f8   : > { %v1073_v19 = vadd.f32 1.0, %v1071_v17  ;;  %v2485_v18 = vld [vmem:[%s3659_s12] ss:$0 sm:$0xff] }
 0x6f9   : > { %v1067_v20 = vpop.f32.mrf.mxu1 }
 0x6fa   : > { %2853 = vrsqrt.f32 %v1073_v19  ;;  %v1072_v21 = vmul.f32 %v3267_v12, %v1067_v20 }
 0x6fb   : > { %v2630_v22 = vpop.f32.mrf.mxu1 }
 0x6fc   : > { %v1074_v23 = vadd.f32 1.0, %v1072_v21 }
 0x6fe   : > { %2855 = vrsqrt.f32 %v1074_v23 }
 0x707   : > { %v2854_v33 = vpop.eup %2853 }
 0x708   : > { %1093 = vrot.lane.b32.xlu1 %v2854_v33, %s3664_s29  ;;  %v1077_v39 = vmul.f32 %v2854_v33, %v3264_v11  ;;  %v1124_v42 = vmul.f32 %v2854_v33, %v2854_v33 }
 0x70b   : > { %v2856_v34 = vpop.eup %2855 }
 0x70c   : > { %1095 = vrot.lane.b32.xlu0 %v2856_v34, %s3664_s29  ;;  %v1078_v43 = vmul.f32 %v2856_v34, %v3267_v12  ;;  %v1125_v44 = vmul.f32 %v2856_v34, %v2856_v34  ;;  %s3684_s29 = smov 2  }
 0x77a   : > { %v1094_v35 = vpop.permute.xlu1 %1093 }
 0x77b   : > { %v1099_v36 = vmul.f32 %v3264_v11, %v1094_v35 }
 0x77d   : > { %1103 = vperm.xlu1 %2796, %v1099_v36  }
 0x77e   : > { %v1096_v37 = vpop.permute.xlu0 %1095 }
 0x77f   : > { %v1100_v38 = vmul.f32 %v3267_v12, %v1096_v37 }
 0x781   : > { %2798 = vset.pattern.permute.xlu1 %v2949_v40  ;;  %1108 = vperm.xlu0 %2797, %v1100_v38  }
 0x782   : > { %1081 = vperm.xlu1 %2798, %v1077_v39  }
 0x785   : > { %2799 = vset.pattern.permute.xlu0 %v2949_v40 }
 0x786   : > { %1128 = vperm.xlu0 %2799, %v1124_v42   ;;  %1086 = vperm.xlu1 %2798, %v1078_v43  }
 0x78a   : > { %1133 = vperm.xlu1 %2798, %v1125_v44   ;;  %2800 = vset.pattern.permute.xlu0 %v2947_v24 }
 0x78e   : > { %2801 = vset.pattern.permute.xlu1 %v2947_v24 }
 0x7f8   : > { %v1104_v46 = vpop.permute.xlu1 %1103 }
 0x7f9   : > { %v1111_v50 = vsel %vm3173_vm5, %v1104_v46, 0.0 }
 0x7fa   : > { %v1113_v53 = vsel %vm582_vm4, %v1111_v50, 0.0 }
 0x7fc   : > { %v1109_v51 = vpop.permute.xlu0 %1108 }
 0x7fd   : > { %v1112_v52 = vsel %vm3178_vm6, %v1109_v51, 0.0  ;;  %v1082_v56 = vpop.permute.xlu1 %1081 }
 0x7fe   : > { %v1114_v54 = vsel %vm582_vm4, %v1112_v52, 0.0  ;;  %v1089_v3 = vmul.f32 %v1082_v56, %v3135_v29 }
 0x7ff   : > { %v1115_v55 = vadd.f32 %v1114_v54, %v1113_v53 }
 0x801   : > { %v1116_v58 = vrot.slane %v1115_v55, 4  ;;  %v1087_v63 = vpop.permute.xlu1 %1086  ;;  %v1129_v5 = vpop.permute.xlu0 %1128 }
 0x802   : > { %v1090_v6 = vmul.f32 %v1087_v63, %v3138_v30  ;;  %v1136_v10 = vsel %vm3173_vm5, %v1129_v5, 0.0 }
 0x803   : > { %v1117_v59 = vadd.f32 %v1116_v58, %v1115_v55 }
 0x805   : > { %v1118_v62 = vrot.slane %v1117_v59, 2  ;;  %v1134_v7 = vpop.permute.xlu1 %1133 }
 0x806   : > { %v1137_v13 = vsel %vm3178_vm6, %v1134_v7, 0.0 }
 0x807   : > { %v1119_v0 = vadd.f32 %v1118_v62, %v1117_v59 }
 0x809   : > { %v1120_v2 = vrot.slane %v1119_v0, 1 }
 0x80b   : > { %v1121_v4 = vadd.f32 %v1120_v2, %v1119_v0 }
 0x80d   : > { %v1122_v8 = vmul.f32 %v1121_v4, %v1089_v3  ;;  %v1123_v9 = vmul.f32 %v1121_v4, %v1090_v6 }
 0x80f   : > { %v1138_v14 = vadd.f32 %v1136_v10, %v1122_v8  ;;  %v1139_v16 = vadd.f32 %v1137_v13, %v1123_v9 }
 0x811   : > { %v1197_v17 = vpack.c.bf16 %v1139_v16, %v1138_v14 }
 0x813   : > { %2642 = vmatmul.mubr.msk.bf16.vlgmr.msra.gmra.mxu1 %vm582_vm4, %v1197_v17 }
 0x814   : > { %2655 = vmatprep.mubr.msk.bf16.mxu1 %vm2944_vm1, %v2943_v1 }
 0x8d3   : > { %v1243_v19 = vpop.f32.mrf.mxu1 }
 0x8d4   : > { %v1244_v20 = vadd.f32 %v2485_v18, %v1243_v19 }
 0x8d5   : > { %v2643_v21 = vpop.f32.mrf.mxu1 }
 0x8d6   : > { %v1250_v22 = vmax.f32 %v1244_v20, 0.0 }
 0x8d7   : > { %v1246_v23 = vpop.f32.mrf.mxu1 }
 0x8d8   : > { %v1247_v33 = vadd.f32 %v2485_v18, %v1246_v23  ;;  %v1252_v34 = vadd.f32 %v1250_v22, %v3157_v47 }
 0x8d9   : > { %v2644_v35 = vpop.f32.mrf.mxu1 }
 0x8da   : > { %v1251_v36 = vmax.f32 %v1247_v33, 0.0  ;;  %v1254_v37 = vsel %vm689_vm3, %v1252_v34, 0.0 }
 0x8db   : > { %1255 = vadd.xlane.f32.xlu1 %v1254_v37 }
 0x8dc   : > { %v1253_v38 = vadd.f32 %v1251_v36, %v3160_v48 }
 0x8de   : > { %v1257_v39 = vsel %vm689_vm3, %v1253_v38, 0.0 }
 0x8df   : > { %1258 = vadd.xlane.f32.xlu0 %v1257_v39 }
 0x964   : > { %v1256_v42 = vpop.xlane.xlu1 %1255 }
 0x965   : > { %v1260_v43 = vmul.f32 0.03125, %v1256_v42  ;;  %v2839_v42 = vld [vmem:[%s3658_s11 + $0x18] sm:$0xff]  }
 0x967   : > { %v1262_v44 = vsub.f32 %v1252_v34, %v1260_v43  ;;  %v2840_v43 = vld [vmem:[%s3658_s11 + $0x10] sm:$0xff]  }
 0x968   : > { %v1259_v46 = vpop.xlane.xlu0 %1258 }
 0x969   : > { %v1261_v50 = vmul.f32 0.03125, %v1259_v46  ;;  %v1264_v51 = vmul.f32 %v1262_v44, %v1262_v44  ;;  %v2491_v46 = vld [vmem:[%s3250_s19 + $0x10] sm:$0xff] }
 0x96b   : > { %v1263_v52 = vsub.f32 %v1253_v38, %v1261_v50  ;;  %v1266_v53 = vsel %vm689_vm3, %v1264_v51, 0.0 }
 0x96c   : > { %1267 = vadd.xlane.f32.xlu0 %v1266_v53 }
 0x96d   : > { %v1265_v47 = vmul.f32 %v1263_v52, %v1263_v52 }
 0x96f   : > { %v1269_v54 = vsel %vm689_vm3, %v1265_v47, 0.0  ;;  %v2492_v47 = vld [vmem:[%s3250_s19 + $0x18] sm:$0xff] }
 0x970   : > { %1270 = vadd.xlane.f32.xlu0 %v1269_v54 }
 0x9f5   : > { %v1268_v55 = vpop.xlane.xlu0 %1267 }
 0x9f6   : > { %v1272_v56 = vmul.f32 0.03125, %v1268_v55 }
 0x9f8   : > { %v1274_v48 = vadd.f32 1e-05, %v1272_v56 }
 0x9f9   : > { %v1271_v58 = vpop.xlane.xlu0 %1270 }
 0x9fa   : > { %2857 = vrsqrt.f32 %v1274_v48  ;;  %v1273_v59 = vmul.f32 0.03125, %v1271_v58 }
 0x9fc   : > { %v1275_v62 = vadd.f32 1e-05, %v1273_v59 }
 0x9fe   : > { %2859 = vrsqrt.f32 %v1275_v62 }
 0xa07   : > { %v2858_v63 = vpop.eup %2857 }
 0xa08   : > { %v1278_v0 = vmul.f32 %v2858_v63, %v1262_v44 }
 0xa0a   : > { %v1280_v4 = vmul.f32 %v3147_v41, %v1278_v0 }
 0xa0b   : > { %v2860_v2 = vpop.eup %2859 }
 0xa0c   : > { %v1279_v3 = vmul.f32 %v2860_v2, %v1263_v52  ;;  %v3323_v6 = vadd.f32 %v3153_v45, %v1280_v4 }
 0xa0e   : > { %v1281_v5 = vmul.f32 %v3147_v41, %v1279_v3 }
 0xa10   : > { %v3326_v7 = vadd.f32 %v3153_v45, %v1281_v5 }
 0xa12   : > { %v1284_v8 = vpack.c.bf16 %v3326_v7, %v3323_v6 }
 0xa14   : > { %2650 = vmatmul.mubr.msk.bf16.vlgmr.msra.gmra.mxu0 %vm689_vm3, %v1284_v8 }
 0xa15   : > { %2660 = vmatpush3.bf16.msra.mxu0 %v3204_v26  ;;  %2663 = vmatprep.mubr.msk.bf16.mxu0 %vm2944_vm1, %v2943_v1 }
 0xa16   : > { %2661 = vmatprep.subr.bf16.mxu0 %v2943_v1 }
 0xa19   : > { %2662 = vmatpush3.bf16.msra.mxu0 %v3211_v31 }
 0xa1a   : > { %2673 = vmatprep.subr.bf16.mxu0 %v2943_v1 }
 0xad4   : > { %v1322_v9 = vpop.f32.mrf.mxu0 }
 0xad6   : > { %v2651_v10 = vpop.f32.mrf.mxu0 }
 0xad8   : > { %v1325_v13 = vpop.f32.mrf.mxu0 }
 0xad9   : > { %v1329_v14 = vpack.c.bf16 %v1325_v13, %v1322_v9 }
 0xada   : > { %v2652_v16 = vpop.f32.mrf.mxu0 }
 0xadb   : > { %2654 = vmatpush3.bf16.msra.mxu1 %v1329_v14 }
 0xadc   : > { %2667 = vmatprep.subr.bf16.mxu1 %v2943_v1 }
 0xade   : > { %2656 = vmatmul.mubr.msk.bf16.vlgmr.msra.gmra.mxu1 %vm582_vm4, %v3194_v25 }
 0xadf   : > { %2669 = vmatprep.mubr.msk.bf16.mxu1 %vm2944_vm1, %v2943_v1 }
 0xb9e   : > { %v1364_v17 = vpop.f32.mrf.mxu1 }
 0xb9f   : > { %v1365_v19 = vadd.f32 %v3218_v32, %v1364_v17 }
 0xba0   : > { %v2657_v18 = vpop.f32.mrf.mxu1 }
 0xba1   : > { %v1371_v23 = vmax.f32 %v1365_v19, 0.0 }
 0xba2   : > { %v1367_v20 = vpop.f32.mrf.mxu1 }
 0xba3   : > { %v1368_v21 = vadd.f32 %v3218_v32, %v1367_v20 }
 0xba4   : > { %v2658_v22 = vpop.f32.mrf.mxu1 }
 0xba5   : > { %v1372_v33 = vmax.f32 %v1368_v21, 0.0 }
 0xba7   : > { %v1373_v34 = vpack.c.bf16 %v1372_v33, %v1371_v23 }
 0xba9   : > { %2664 = vmatmul.mubr.msk.bf16.vlgmr.msra.gmra.mxu0 %vm689_vm3, %v1373_v34 }
 0xbaa   : > { %2675 = vmatprep.mubr.msk.bf16.mxu0 %vm2944_vm1, %v2943_v1 }
 0xc69   : > { %v1411_v35 = vpop.f32.mrf.mxu0 }
 0xc6b   : > { %v2665_v36 = vpop.f32.mrf.mxu0 }
 0xc6d   : > { %v1414_v37 = vpop.f32.mrf.mxu0 }
 0xc6e   : > { %v1418_v38 = vpack.c.bf16 %v1414_v37, %v1411_v35 }
 0xc6f   : > { %v2666_v39 = vpop.f32.mrf.mxu0 }
 0xc70   : > { %2668 = vmatpush3.bf16.msra.mxu1 %v1418_v38 }
 0xc71   : > { %2679 = vmatprep.subr.bf16.mxu1 %v2943_v1 }
 0xc73   : > { %2670 = vmatmul.mubr.msk.bf16.vlgmr.msra.gmra.mxu1 %vm582_vm4, %v3194_v25 }
 0xc74   : > { %2680 = vmatpush3.bf16.msra.mxu1 %v2839_v42  ;;  %2683 = vmatprep.mubr.msk.bf16.mxu1 %vm2944_vm1, %v2943_v1 }
 0xc75   : > { %2681 = vmatprep.subr.bf16.mxu1 %v2943_v1 }
 0xc78   : > { %2682 = vmatpush3.bf16.msra.mxu1 %v2840_v43 }
 0xc79   : > { %2693 = vmatprep.subr.bf16.mxu1 %v2943_v1 }
 0xc7b   : > { %2684 = vmatmul.mubr.msk.bf16.vlgmr.msra.gmra.mxu1 %vm689_vm3, %v1284_v8 }
 0xc7c   : > { %2694 = vmatpush3.bf16.msra.mxu1 %v3117_v27  ;;  %2697 = vmatprep.mubr.msk.bf16.mxu1 %vm2944_vm1, %v2943_v1 }
 0xc7d   : > { %2695 = vmatprep.subr.bf16.mxu1 %v2943_v1 }
 0xc80   : > { %2696 = vmatpush3.bf16.msra.mxu1 %v3123_v28 }
 0xc81   : > { %2707 = vmatprep.subr.bf16.mxu1 %v2943_v1 }
 0xd33   : > { %v1453_v44 = vpop.f32.mrf.mxu1 }
 0xd34   : > { %v1454_v50 = vadd.f32 %v3255_v49, %v1453_v44 }
 0xd35   : > { %v2671_v51 = vpop.f32.mrf.mxu1 }
 0xd36   : > { %v1463_v52 = vadd.f32 %v2491_v46, %v1454_v50 }
 0xd37   : > { %v1456_v53 = vpop.f32.mrf.mxu1 }
 0xd38   : > { %v1457_v54 = vadd.f32 %v3255_v49, %v1456_v53  ;;  %1467 = vrot.lane.b32.xlu1 %v1463_v52, %s2945_s20 }
 0xd39   : > { %v2672_v27 = vpop.f32.mrf.mxu1 }
 0xd3a   : > { %v1464_v55 = vadd.f32 %v2492_v47, %v1457_v54 }
 0xd3b   : > { %v1700_v56 = vpop.f32.mrf.mxu1 }
 0xd3c   : > { %1469 = vrot.lane.b32.xlu0 %v1464_v55, %s2945_s20 }
 0xd3d   : > { %v2685_v28 = vpop.f32.mrf.mxu1 }
 0xd3f   : > { %v1703_v48 = vpop.f32.mrf.mxu1 }
 0xd40   : > { %v1708_v58 = vpack.c.bf16 %v1703_v48, %v1700_v56 }
 0xd41   : > { %v2686_v59 = vpop.f32.mrf.mxu1 }
 0xdaa   : > { %v1468_v62 = vpop.permute.xlu1 %1467 }
 0xdab   : > { %vm1473_vm9 = vcmp.ge.f32.partialorder %v1463_v52, %v1468_v62 }
 0xdac   : > { %v3374_v0 = vsel %vm1473_vm9, 1.0, %v2943_v1  ;;  %vm2323_vm9 = vcmask 24576  }
 0xdae   : > { %v1470_v63 = vpop.permute.xlu0 %1469 }
 0xdaf   : > { %vm1474_vm10 = vcmp.ge.f32.partialorder %v1464_v55, %v1470_v63 }
 0xdb0   : > { %v3377_v2 = vsel %vm1474_vm10, 1.0, %v2943_v1 }
 0xdb1   : > { %v1534_v3 = vpack.c.bf16 %v3377_v2, %v3374_v0 }
 0xdb3   : > { %1536 = vrot.lane.b32.xlu1 %v1534_v3, %s3666_s28  ;;  %s544_s28 = scalar_lea.vmem [#allocation2], %s543_s3 }
 0xe25   : > { %v1537_v4 = vpop.permute.xlu1 %1536 }
 0xe26   : > { %2674 = vmatpush3.bf16.msra.mxu0 %v1537_v4 }
 0xe27   : > { %2687 = vmatprep.subr.bf16.mxu0 %v2943_v1 }
 0xe29   : > { %2676 = vmatmul.mubr.msk.bf16.vlgmr.msra.gmra.mxu0 %vm582_vm4, %v3274_v15 }
 0xe2a   : > { %2688 = vmatpush3.bf16.msra.mxu0 %v1708_v58  ;;  %2689 = vmatprep.mubr.msk.bf16.mxu0 %vm2944_vm1, %v2943_v1 }
 0xe2b   : > { %2701 = vmatprep.subr.bf16.mxu0 %v2943_v1 }
 0xee9   : > { %v1573_v5 = vpop.f32.mrf.mxu0 }
 0xeea   : > { %v1580_v8 = vmul.f32 %v3374_v0, %v1573_v5 }
 0xeeb   : > { %v2677_v9 = vpop.f32.mrf.mxu0 }
 0xeec   : > { %v1582_v10 = vadd.f32 1.0, %v1580_v8 }
 0xeed   : > { %v1576_v13 = vpop.f32.mrf.mxu0 }
 0xeee   : > { %2861 = vrsqrt.f32 %v1582_v10  ;;  %v1581_v14 = vmul.f32 %v3377_v2, %v1576_v13 }
 0xeef   : > { %v2678_v16 = vpop.f32.mrf.mxu0 }
 0xef0   : > { %v1583_v17 = vadd.f32 1.0, %v1581_v14 }
 0xef2   : > { %2863 = vrsqrt.f32 %v1583_v17 }
 0xefb   : > { %v2862_v18 = vpop.eup %2861 }
 0xefc   : > { %1602 = vrot.lane.b32.xlu1 %v2862_v18, %s3684_s29  ;;  %v1586_v34 = vmul.f32 %v2862_v18, %v3374_v0  ;;  %v1633_v35 = vmul.f32 %v2862_v18, %v2862_v18 }
 0xeff   : > { %v2864_v19 = vpop.eup %2863 }
 0xf00   : > { %1604 = vrot.lane.b32.xlu1 %v2864_v19, %s3684_s29  ;;  %v1587_v33 = vmul.f32 %v2864_v19, %v3377_v2  ;;  %v1634_v36 = vmul.f32 %v2864_v19, %v2864_v19 }
 0xf6e   : > { %v1603_v20 = vpop.permute.xlu1 %1602 }
 0xf6f   : > { %v1608_v21 = vmul.f32 %v3374_v0, %v1603_v20 }
 0xf71   : > { %1612 = vperm.xlu0 %2800, %v1608_v21  }
 0xf72   : > { %v1605_v22 = vpop.permute.xlu1 %1604 }
 0xf73   : > { %v1609_v23 = vmul.f32 %v3377_v2, %v1605_v22 }
 0xf75   : > { %2803 = vset.pattern.permute.xlu0 %v2949_v40  ;;  %1617 = vperm.xlu1 %2801, %v1609_v23  }
 0xf76   : > { %1595 = vperm.xlu0 %2803, %v1587_v33  }
 0xf79   : > { %2802 = vset.pattern.permute.xlu1 %v2949_v40 }
 0xf7a   : > { %1590 = vperm.xlu1 %2802, %v1586_v34   ;;  %2805 = vset.pattern.permute.xlu0 %v2947_v24 }
 0xf7e   : > { %1637 = vperm.xlu1 %2802, %v1633_v35  }
 0xf82   : > { %1642 = vperm.xlu1 %2802, %v1634_v36  }
 0xf86   : > { %2804 = vset.pattern.permute.xlu1 %v2947_v24 }
 0xfec   : > { %v1613_v37 = vpop.permute.xlu0 %1612 }
 0xfed   : > { %v1620_v38 = vsel %vm3173_vm5, %v1613_v37, 0.0 }
 0xfee   : > { %v1622_v43 = vsel %vm582_vm4, %v1620_v38, 0.0 }
 0xff0   : > { %v1618_v39 = vpop.permute.xlu1 %1617 }
 0xff1   : > { %v1621_v42 = vsel %vm3178_vm6, %v1618_v39, 0.0  ;;  %v1596_v27 = vpop.permute.xlu0 %1595 }
 0xff2   : > { %v1623_v44 = vsel %vm582_vm4, %v1621_v42, 0.0  ;;  %v1599_v28 = vmul.f32 %v1596_v27, %v3138_v30 }
 0xff3   : > { %v1624_v46 = vadd.f32 %v1623_v44, %v1622_v43 }
 0xff5   : > { %v1625_v50 = vrot.slane %v1624_v46, 4  ;;  %v1591_v51 = vpop.permute.xlu1 %1590 }
 0xff6   : > { %v1598_v48 = vmul.f32 %v1591_v51, %v3135_v29  ;;  %v2505_v29 = vld [vmem:[%s3659_s12 + $0x1] ss:$0 sm:$0xff] }
 0xff7   : > { %v1626_v52 = vadd.f32 %v1625_v50, %v1624_v46 }
 0xff9   : > { %v1627_v53 = vrot.slane %v1626_v52, 2  ;;  %v1638_v47 = vpop.permute.xlu1 %1637 }
 0xffa   : > { %v1645_v63 = vsel %vm3173_vm5, %v1638_v47, 0.0 }
 0xffb   : > { %v1628_v54 = vadd.f32 %v1627_v53, %v1626_v52 }
 0xffd   : > { %v1629_v55 = vrot.slane %v1628_v54, 1  ;;  %v1643_v58 = vpop.permute.xlu1 %1642 }
 0xffe   : > { %v1646_v3 = vsel %vm3178_vm6, %v1643_v58, 0.0 }
 0xfff   : > { %v1630_v56 = vadd.f32 %v1629_v55, %v1628_v54 }
0x1001   : > { %v1632_v59 = vmul.f32 %v1630_v56, %v1599_v28  ;;  %v1631_v62 = vmul.f32 %v1630_v56, %v1598_v48 }
0x1003   : > { %v1647_v4 = vadd.f32 %v1645_v63, %v1631_v62  ;;  %v1648_v5 = vadd.f32 %v1646_v3, %v1632_v59 }
0x1005   : > { %v1707_v8 = vpack.c.bf16 %v1648_v5, %v1647_v4 }
0x1007   : > { %2690 = vmatmul.mubr.msk.bf16.vlgmr.msra.gmra.mxu0 %vm582_vm4, %v1707_v8 }
0x1008   : > { %2703 = vmatprep.mubr.msk.bf16.mxu0 %vm2944_vm1, %v2943_v1 }
0x10c7   : > { %v1754_v30 = vpop.f32.mrf.mxu0 }
0x10c8   : > { %v1755_v9 = vadd.f32 %v2505_v29, %v1754_v30 }
0x10c9   : > { %v2691_v10 = vpop.f32.mrf.mxu0 }
0x10ca   : > { %v1761_v13 = vmax.f32 %v1755_v9, 0.0 }
0x10cb   : > { %v1757_v14 = vpop.f32.mrf.mxu0 }
0x10cc   : > { %v1758_v16 = vadd.f32 %v2505_v29, %v1757_v14  ;;  %v1763_v17 = vadd.f32 %v1761_v13, %v3323_v6 }
0x10cd   : > { %v2692_v18 = vpop.f32.mrf.mxu0 }
0x10ce   : > { %v1762_v19 = vmax.f32 %v1758_v16, 0.0  ;;  %v1765_v20 = vsel %vm689_vm3, %v1763_v17, 0.0 }
0x10cf   : > { %1766 = vadd.xlane.f32.xlu0 %v1765_v20 }
0x10d0   : > { %v1764_v21 = vadd.f32 %v1762_v19, %v3326_v7 }
0x10d2   : > { %v1768_v22 = vsel %vm689_vm3, %v1764_v21, 0.0 }
0x10d3   : > { %1769 = vadd.xlane.f32.xlu1 %v1768_v22 }
0x1158   : > { %v1767_v23 = vpop.xlane.xlu0 %1766 }
0x1159   : > { %v1771_v33 = vmul.f32 0.03125, %v1767_v23  ;;  %v2512_v23 = vld [vmem:[%s3250_s19 + $0x28] sm:$0xff] }
0x115b   : > { %v1773_v34 = vsub.f32 %v1763_v17, %v1771_v33  ;;  %v2842_v17 = vld [vmem:[%s3658_s11 + $0x20] sm:$0xff]  }
0x115c   : > { %v1770_v35 = vpop.xlane.xlu1 %1769 }
0x115d   : > { %v1772_v36 = vmul.f32 0.03125, %v1770_v35  ;;  %v1775_v37 = vmul.f32 %v1773_v34, %v1773_v34 }
0x115f   : > { %v1774_v38 = vsub.f32 %v1764_v21, %v1772_v36  ;;  %v1777_v39 = vsel %vm689_vm3, %v1775_v37, 0.0 }
0x1160   : > { %1778 = vadd.xlane.f32.xlu0 %v1777_v39 }
0x1161   : > { %v1776_v6 = vmul.f32 %v1774_v38, %v1774_v38 }
0x1163   : > { %v1780_v42 = vsel %vm689_vm3, %v1776_v6, 0.0 }
0x1164   : > { %1781 = vadd.xlane.f32.xlu0 %v1780_v42 }
0x11e9   : > { %v1779_v43 = vpop.xlane.xlu0 %1778 }
0x11ea   : > { %v1783_v44 = vmul.f32 0.03125, %v1779_v43 }
0x11ec   : > { %v1785_v7 = vadd.f32 1e-05, %v1783_v44 }
0x11ed   : > { %v1782_v46 = vpop.xlane.xlu0 %1781 }
0x11ee   : > { %2865 = vrsqrt.f32 %v1785_v7  ;;  %v1784_v50 = vmul.f32 0.03125, %v1782_v46 }
0x11f0   : > { %v1786_v51 = vadd.f32 1e-05, %v1784_v50 }
0x11f2   : > { %2867 = vrsqrt.f32 %v1786_v51 }
0x11fb   : > { %v2866_v52 = vpop.eup %2865 }
0x11fc   : > { %v1789_v53 = vmul.f32 %v2866_v52, %v1773_v34 }
0x11fe   : > { %v1791_v27 = vmul.f32 %v3147_v41, %v1789_v53 }
0x11ff   : > { %v2868_v47 = vpop.eup %2867 }
0x1200   : > { %v1790_v54 = vmul.f32 %v2868_v47, %v1774_v38  ;;  %v3427_v56 = vadd.f32 %v3153_v45, %v1791_v27 }
0x1202   : > { %v1792_v55 = vmul.f32 %v3147_v41, %v1790_v54 }
0x1204   : > { %v3430_v28 = vadd.f32 %v3153_v45, %v1792_v55 }
0x1206   : > { %v1795_v48 = vpack.c.bf16 %v3430_v28, %v3427_v56 }
0x1208   : > { %2698 = vmatmul.mubr.msk.bf16.vlgmr.msra.gmra.mxu1 %vm689_vm3, %v1795_v48 }
0x1209   : > { %2708 = vmatpush3.bf16.msra.mxu1 %v3204_v26  ;;  %2711 = vmatprep.mubr.msk.bf16.mxu1 %vm2944_vm1, %v2943_v1 }
0x120a   : > { %2709 = vmatprep.subr.bf16.mxu1 %v2943_v1 }
0x120d   : > { %2710 = vmatpush3.bf16.msra.mxu1 %v3211_v31 }
0x120e   : > { %2721 = vmatprep.subr.bf16.mxu1 %v2943_v1 }
0x12c8   : > { %v1833_v41 = vpop.f32.mrf.mxu1 }
0x12ca   : > { %v2699_v58 = vpop.f32.mrf.mxu1 }
0x12cc   : > { %v1836_v45 = vpop.f32.mrf.mxu1 }
0x12cd   : > { %v1840_v59 = vpack.c.bf16 %v1836_v45, %v1833_v41 }
0x12ce   : > { %v2700_v62 = vpop.f32.mrf.mxu1 }
0x12cf   : > { %2702 = vmatpush3.bf16.msra.mxu0 %v1840_v59 }
0x12d0   : > { %2715 = vmatprep.subr.bf16.mxu0 %v2943_v1 }
0x12d2   : > { %2704 = vmatmul.mubr.msk.bf16.vlgmr.msra.gmra.mxu0 %vm582_vm4, %v3194_v25 }
0x12d3   : > { %2717 = vmatprep.mubr.msk.bf16.mxu0 %vm2944_vm1, %v2943_v1 }
0x1392   : > { %v1875_v26 = vpop.f32.mrf.mxu0 }
0x1393   : > { %v1876_v31 = vadd.f32 %v3218_v32, %v1875_v26 }
0x1394   : > { %v2705_v63 = vpop.f32.mrf.mxu0 }
0x1395   : > { %v1882_v8 = vmax.f32 %v1876_v31, 0.0 }
0x1396   : > { %v1878_v3 = vpop.f32.mrf.mxu0 }
0x1397   : > { %v1879_v4 = vadd.f32 %v3218_v32, %v1878_v3  ;;  %v2841_v32 = vld [vmem:[%s3658_s11 + $0x28] sm:$0xff]  }
0x1398   : > { %v2706_v5 = vpop.f32.mrf.mxu0 }
0x1399   : > { %v1883_v29 = vmax.f32 %v1879_v4, 0.0 }
0x139b   : > { %v1884_v30 = vpack.c.bf16 %v1883_v29, %v1882_v8 }
0x139d   : > { %2712 = vmatmul.mubr.msk.bf16.vlgmr.msra.gmra.mxu1 %vm689_vm3, %v1884_v30 }
0x139e   : > { %2723 = vmatprep.mubr.msk.bf16.mxu1 %vm2944_vm1, %v2943_v1 }
0x145d   : > { %v1922_v9 = vpop.f32.mrf.mxu1 }
0x145f   : > { %v2713_v10 = vpop.f32.mrf.mxu1 }
0x1461   : > { %v1925_v13 = vpop.f32.mrf.mxu1 }
0x1462   : > { %v1929_v14 = vpack.c.bf16 %v1925_v13, %v1922_v9 }
0x1463   : > { %v2714_v16 = vpop.f32.mrf.mxu1 }
0x1464   : > { %2716 = vmatpush3.bf16.msra.mxu0 %v1929_v14 }
0x1465   : > { %2727 = vmatprep.subr.bf16.mxu0 %v2943_v1 }
0x1467   : > { %2718 = vmatmul.mubr.msk.bf16.vlgmr.msra.gmra.mxu0 %vm582_vm4, %v3194_v25  ;;  %v2511_v25 = vld [vmem:[%s3250_s19 + $0x20] sm:$0xff]  ;;  %s3685_s19 = smov 126  }
0x1468   : > { %2728 = vmatpush3.bf16.msra.mxu0 %v2841_v32  ;;  %2731 = vmatprep.mubr.msk.bf16.mxu0 %vm2944_vm1, %v2943_v1 }
0x1469   : > { %2729 = vmatprep.subr.bf16.mxu0 %v2943_v1 }
0x146c   : > { %2730 = vmatpush3.bf16.msra.mxu0 %v2842_v17 }
0x146d   : > { %2741 = vmatprep.subr.bf16.mxu0 %v2943_v1 }
0x146f   : > { %2732 = vmatmul.mubr.msk.bf16.vlgmr.msra.gmra.mxu0 %vm689_vm3, %v1795_v48 }
0x1470   : > { %2745 = vmatprep.mubr.msk.bf16.mxu0 %vm2944_vm1, %v2943_v1 }
0x1527   : > { %v1964_v18 = vpop.f32.mrf.mxu0 }
0x1528   : > { %v1965_v19 = vadd.f32 %v3255_v49, %v1964_v18 }
0x1529   : > { %v2719_v20 = vpop.f32.mrf.mxu0 }
0x152a   : > { %v1974_v21 = vadd.f32 %v2511_v25, %v1965_v19  ;;  %v2877_v25 = vld [vmem:[%s3132_s4] sm:$0xff] }
0x152b   : > { %v1967_v22 = vpop.f32.mrf.mxu0 }
0x152c   : > { %v1968_v33 = vadd.f32 %v3255_v49, %v1967_v22  ;;  %1978 = vrot.lane.b32.xlu0 %v1974_v21, %s2945_s20  ;;  %v2878_v22 = vld [vmem:[%s3132_s4 + $0x8] sm:$0xff]  ;;  %s2346_s4 = sshll.u32 %s544_s28, 4  ;;  %s3608_s4 = int_to_ptr.vmem [resolvable:$true] %s2346_s4 }
0x152d   : > { %v2720_v34 = vpop.f32.mrf.mxu0  ;;  %p2888_p0 = scmp.lt.s32.totalorder %s3608_s4, %s2886_s1 }
0x152e   : > { %v1975_v35 = vadd.f32 %v2512_v23, %v1968_v33 }
0x152f   : > { %v2156_v36 = vpop.f32.mrf.mxu0 }
0x1530   : > { %1980 = vrot.lane.b32.xlu1 %v1975_v35, %s2945_s20  ;;  %s3568_s20 = scalar_lea.vmem %s3663_s16, %s3099_s26 }
0x1531   : > { %v2733_v37 = vpop.f32.mrf.mxu0 }
0x1533   : > { %v2159_v38 = vpop.f32.mrf.mxu0 }
0x1534   : > { %v2164_v39 = vpack.c.bf16 %v2159_v38, %v2156_v36 }
0x1535   : > { %v2734_v6 = vpop.f32.mrf.mxu0 }
0x159e   : > { %v1979_v42 = vpop.permute.xlu0 %1978 }
0x159f   : > { %vm1984_vm11 = vcmp.ge.f32.partialorder %v1974_v21, %v1979_v42  ;;  %v2524_v42 = vld [vmem:[%s3659_s12 + $0x2] ss:$0 sm:$0xff] }
0x15a0   : > { %v2513_v44 = vsel %vm1984_vm11, 1.0, %v2943_v1 }
0x15a2   : > { %v1981_v43 = vpop.permute.xlu1 %1980 }
0x15a3   : > { %vm1985_vm12 = vcmp.ge.f32.partialorder %v1975_v35, %v1981_v43 }
0x15a4   : > { %v2514_v7 = vsel %vm1985_vm12, 1.0, %v2943_v1 }
0x15a5   : > { %v1990_v49 = vpack.c.bf16 %v2514_v7, %v2513_v44 }
0x15a7   : > { %1992 = vrot.lane.b32.xlu1 %v1990_v49, %s3685_s19  ;;  %s2529_s19 = sshll.u32 %s3057_s25, 4  ;;  %s2881_s25 = scalar_lea.vmem %s3608_s4, 16 }
0x15a8   : > { %p2882_p11 = scmp.ne.s32.totalorder %s3608_s4, %s2881_s25 }
0x15aa   : > { %p2883_p12 = pnand %p2882_p11, %p3074_p5 }
0x15ac   : > { %p2884_p13 = pneg %p2883_p12 }
0x1619   : > { %v1993_v46 = vpop.permute.xlu1 %1992 }
0x161a   : > { %2722 = vmatpush3.bf16.msra.mxu1 %v1993_v46 }
0x161b   : > { %2735 = vmatprep.subr.bf16.mxu1 %v2943_v1 }
0x161d   : > { %2724 = vmatmul.mubr.msk.bf16.vlgmr.msra.gmra.mxu1 %vm582_vm4, %v3274_v15 }
0x161e   : > { %2736 = vmatpush3.bf16.msra.mxu1 %v2164_v39  ;;  %2737 = vmatprep.mubr.msk.bf16.mxu1 %vm2944_vm1, %v2943_v1 }
0x16dd   : > { %v2029_v50 = vpop.f32.mrf.mxu1 }
0x16de   : > { %v2036_v51 = vmul.f32 %v2513_v44, %v2029_v50 }
0x16df   : > { %v2725_v52 = vpop.f32.mrf.mxu1 }
0x16e0   : > { %v2038_v53 = vadd.f32 1.0, %v2036_v51 }
0x16e1   : > { %v2032_v47 = vpop.f32.mrf.mxu1 }
0x16e2   : > { %2869 = vrsqrt.f32 %v2038_v53  ;;  %v2037_v54 = vmul.f32 %v2514_v7, %v2032_v47 }
0x16e3   : > { %v2726_v27 = vpop.f32.mrf.mxu1 }
0x16e4   : > { %v2039_v55 = vadd.f32 1.0, %v2037_v54  ;;  %v2808_v54 = vpack.i.bf16 %v3267_v12, %v3264_v11  ;;  %v972_v27 = vsub.f32 1.0, %v3267_v12 }
0x16e6   : > { %2871 = vrsqrt.f32 %v2039_v55  ;;  %v2820_v55 = vpack.i.bf16 %v3377_v2, %v3374_v0 }
0x16ef   : > { %v2870_v48 = vpop.eup %2869 }
0x16f0   : > { %2058 = vrot.lane.b32.xlu1 %v2870_v48, %s3684_s29  ;;  %v2042_v62 = vmul.f32 %v2870_v48, %v2513_v44  ;;  %v2089_v26 = vmul.f32 %v2870_v48, %v2870_v48 }
0x16f3   : > { %v2872_v41 = vpop.eup %2871 }
0x16f4   : > { %2060 = vrot.lane.b32.xlu0 %v2872_v41, %s3684_s29  ;;  %v2043_v63 = vmul.f32 %v2872_v41, %v2514_v7  ;;  %v2090_v31 = vmul.f32 %v2872_v41, %v2872_v41  ;;  %s3606_s29 = scalar_lea.hbm %s3662_s15, %s2529_s19 }
0x1762   : > { %v2059_v15 = vpop.permute.xlu1 %2058 }
0x1763   : > { %v2064_v58 = vmul.f32 %v2513_v44, %v2059_v15 }
0x1765   : > { %2068 = vperm.xlu1 %2804, %v2064_v58  }
0x1766   : > { %v2061_v45 = vpop.permute.xlu0 %2060 }
0x1767   : > { %v2065_v59 = vmul.f32 %v2514_v7, %v2061_v45 }
0x1769   : > { %2806 = vset.pattern.permute.xlu1 %v2949_v40  ;;  %2073 = vperm.xlu0 %2805, %v2065_v59  }
0x176a   : > { %2046 = vperm.xlu1 %2806, %v2042_v62  }
0x176d   : > { %2807 = vset.pattern.permute.xlu0 %v2949_v40 }
0x176e   : > { %2093 = vperm.xlu0 %2807, %v2089_v26   ;;  %2051 = vperm.xlu1 %2806, %v2043_v63   ;;  %v1485_v26 = vsub.f32 1.0, %v3377_v2  ;;  %v2843_v63 = vld [vmem:[%s3660_s13 + $0x8] sm:$0xff]  }
0x176f   : > { %2742 = vmatpush3.bf16.msra.mxu0 %v2843_v63 }
0x1770   : > { %2743 = vmatprep.subr.bf16.mxu0 %v2943_v1 }
0x1772   : > { %2098 = vperm.xlu1 %2806, %v2090_v31   ;;  %v2844_v31 = vld [vmem:[%s3660_s13] sm:$0xff]  }
0x1773   : > { %2744 = vmatpush3.bf16.msra.mxu0 %v2844_v31 }
0x17e0   : > { %v2069_v3 = vpop.permute.xlu1 %2068 }
0x17e1   : > { %v2076_v4 = vsel %vm3173_vm5, %v2069_v3, 0.0 }
0x17e2   : > { %v2078_v29 = vsel %vm582_vm4, %v2076_v4, 0.0 }
0x17e4   : > { %v2074_v5 = vpop.permute.xlu0 %2073 }
0x17e5   : > { %v2077_v8 = vsel %vm3178_vm6, %v2074_v5, 0.0  ;;  %v2047_v10 = vpop.permute.xlu1 %2046 }
0x17e6   : > { %v2079_v30 = vsel %vm582_vm4, %v2077_v8, 0.0  ;;  %v2054_v19 = vmul.f32 %v2877_v25, %v2047_v10 }
0x17e7   : > { %v2080_v9 = vadd.f32 %v2079_v30, %v2078_v29  ;;  %v2495_v29 = vadd.s32 4294967288, %v3170_v57 }
0x17e9   : > { %v2081_v13 = vrot.slane %v2080_v9, 4  ;;  %v2052_v32 = vpop.permute.xlu1 %2051  ;;  %v2094_v21 = vpop.permute.xlu0 %2093  ;;  %vm1483_vm14 = vcmp.lt.s32.totalorder %v2495_v29, 2  ;;  %vm1480_vm15 = vcmp.ge.s32.totalorder %v2495_v29, 0  ;;  %vm1481_vm0 = vcmp.lt.s32.totalorder %v2495_v29, 4 }
0x17ea   : > { %v2055_v23 = vmul.f32 %v2878_v22, %v2052_v32  ;;  %v2101_v36 = vsel %vm3173_vm5, %v2094_v21, 0.0 }
0x17eb   : > { %v2082_v14 = vadd.f32 %v2081_v13, %v2080_v9  ;;  %v1508_v13 = vand.u32 1, %v2495_v29 }
0x17ed   : > { %v2083_v16 = vrot.slane %v2082_v14, 2  ;;  %v2099_v33 = vpop.permute.xlu1 %2098  ;;  %vm3539_vm13 = vcmp.eq.s32.totalorder %v1508_v13, 0 }
0x17ee   : > { %v2102_v37 = vsel %vm3178_vm6, %v2099_v33, 0.0  ;;  %vm3551_vm6 = vmand %vm1480_vm15, %vm1481_vm0 }
0x17ef   : > { %v2084_v17 = vadd.f32 %v2083_v16, %v2082_v14  ;;  %v2480_v16 = vadd.s32 4294967292, %v3170_v57 }
0x17f1   : > { %v2085_v18 = vrot.slane %v2084_v17, 1  ;;  %v995_v32 = vand.u32 1, %v2480_v16  ;;  %vm967_vm2 = vcmp.ge.s32.totalorder %v2480_v16, 0  ;;  %vm970_vm5 = vcmp.lt.s32.totalorder %v2480_v16, 2 }
0x17f3   : > { %v2086_v20 = vadd.f32 %v2085_v18, %v2084_v17  ;;  %vm3546_vm1 = vcmp.eq.s32.totalorder %v995_v32, 0 }
0x17f5   : > { %v2087_v34 = vmul.f32 %v2086_v20, %v2054_v19  ;;  %v2088_v35 = vmul.f32 %v2086_v20, %v2055_v23 }
0x17f7   : > { %v2103_v38 = vadd.f32 %v2101_v36, %v2087_v34  ;;  %v2104_v39 = vadd.f32 %v2102_v37, %v2088_v35 }
0x17f9   : > { %v2163_v6 = vpack.c.bf16 %v2104_v39, %v2103_v38 }
0x17fb   : > { %2738 = vmatmul.mubr.msk.bf16.vlgmr.msra.gmra.mxu1 %vm582_vm4, %v2163_v6  ;;  %vm968_vm4 = vcmp.lt.s32.totalorder %v2480_v16, 4 }
0x17fc   : > { %vm3557_vm7 = vmand %vm967_vm2, %vm968_vm4 }
0x18bb   : > { %v2210_v43 = vpop.f32.mrf.mxu1 }
0x18bc   : > { %v2211_v44 = vadd.f32 %v2524_v42, %v2210_v43 }
0x18bd   : > { %v2739_v7 = vpop.f32.mrf.mxu1 }
0x18be   : > { %v2217_v49 = vmax.f32 %v2211_v44, 0.0 }
0x18bf   : > { %v2213_v46 = vpop.f32.mrf.mxu1 }
0x18c0   : > { %v2214_v50 = vadd.f32 %v2524_v42, %v2213_v46  ;;  %v2219_v60 = vadd.f32 %v2217_v49, %v3427_v56  ;;  %v971_v56 = vsub.f32 1.0, %v3264_v11 }
0x18c1   : > { %v2740_v51 = vpop.f32.mrf.mxu1 }
0x18c2   : > { %v2218_v61 = vmax.f32 %v2214_v50, 0.0  ;;  %v2221_v52 = vsel %vm689_vm3, %v2219_v60, 0.0 }
0x18c3   : > { %2222 = vadd.xlane.f32.xlu1 %v2221_v52 }
0x18c4   : > { %v2220_v53 = vadd.f32 %v2218_v61, %v3430_v28  ;;  %v1484_v28 = vsub.f32 1.0, %v3374_v0 }
0x18c6   : > { %v2224_v47 = vsel %vm689_vm3, %v2220_v53, 0.0 }
0x18c7   : > { %2225 = vadd.xlane.f32.xlu0 %v2224_v47 }
0x18d4   : > { %2809 = vperm.xlu1 %2806, %v2808_v54  }
0x18d8   : > { %990 = vperm.xlu1 %2806, %v972_v27  }
0x18dc   : > { %2813 = vset.pattern.permute.xlu1 %v2947_v24 }
0x18dd   : > { %2815 = vperm.xlu1 %2813, %v2808_v54  }
0x18e1   : > { %1006 = vperm.xlu1 %2813, %v971_v56  }
0x18e5   : > { %2819 = vset.pattern.permute.xlu1 %v2949_v40 }
0x18e6   : > { %2821 = vperm.xlu1 %2819, %v2820_v55  }
0x18ea   : > { %1498 = vperm.xlu1 %2819, %v1484_v28  }
0x18ee   : > { %2826 = vset.pattern.permute.xlu1 %v2947_v24 }
0x18ef   : > { %2828 = vperm.xlu1 %2826, %v2820_v55  }
0x18f3   : > { %1519 = vperm.xlu1 %2826, %v1484_v28   ;;  %v2880_v28 = vld [vmem:[%s3653_s6] ss:$0 sm:$0xff] }
0x194c   : > { %v2223_v12 = vpop.xlane.xlu1 %2222 }
0x194d   : > { %v2227_v48 = vmul.f32 0.03125, %v2223_v12 }
0x194f   : > { %v3515_v41 = vsub.f32 %v2219_v60, %v2227_v48  ;;  %v2879_v60 = vld [vmem:[%s3652_s5] ss:$0 sm:$0xff] }
0x1950   : > { %v2226_v15 = vpop.xlane.xlu0 %2225  ;;  %v2810_v2 = vpop.permute.xlu1 %2809 }
0x1951   : > { %v2228_v11 = vmul.f32 0.03125, %v2226_v15  ;;  %v2231_v58 = vmul.f32 %v3515_v41, %v3515_v41  ;;  %v2811_v22 = vunpack.i.l.bf16 %v2810_v2 }
0x1953   : > { %v3519_v45 = vsub.f32 %v2220_v53, %v2228_v11  ;;  %v2233_v59 = vsel %vm689_vm3, %v2231_v58, 0.0  ;;  %v2812_v53 = vunpack.i.h.bf16 %v2810_v2 }
0x1954   : > { %2234 = vadd.xlane.f32.xlu0 %v2233_v59  ;;  %v991_v3 = vpop.permute.xlu1 %990 }
0x1955   : > { %v2232_v0 = vmul.f32 %v3519_v45, %v3519_v45 }
0x1957   : > { %v2236_v62 = vsel %vm689_vm3, %v2232_v0, 0.0 }
0x1958   : > { %2237 = vadd.xlane.f32.xlu0 %v2236_v62  ;;  %v2816_v4 = vpop.permute.xlu1 %2815 }
0x1959   : > { %v2817_v23 = vunpack.i.l.bf16 %v2816_v4  ;;  %v2818_v50 = vunpack.i.h.bf16 %v2816_v4 }
0x196e   : > { %985 = vperm.xlu0 %2807, %v971_v56  }
0x1972   : > { %1503 = vperm.xlu0 %2807, %v1485_v26  }
0x1976   : > { %2825 = vset.pattern.permute.xlu0 %v2947_v24  ;;  %v1007_v24 = vpop.permute.xlu1 %1006 }
0x1977   : > { %1010 = vperm.xlu0 %2825, %v972_v27   ;;  %v1013_v37 = vsel %vm3546_vm1, %v2817_v23, %v1007_v24  ;;  %v994_v27 = vsel %vm970_vm5, %v2812_v53, %v991_v3 }
0x197a   : > { %v3535_v5 = vpop.permute.xlu1 %2821 }
0x197b   : > { %1523 = vperm.xlu0 %2825, %v1485_v26   ;;  %v2823_v20 = vunpack.i.l.bf16 %v3535_v5  ;;  %v2824_v56 = vunpack.i.h.bf16 %v3535_v5 }
0x197e   : > { %v1499_v8 = vpop.permute.xlu1 %1498 }
0x197f   : > { %2832 = vset.pattern.permute.xlu0 %v2949_v40  ;;  %v1506_v33 = vsel %vm1483_vm14, %v2823_v20, %v1499_v8 }
0x1982   : > { %v2829_v30 = vpop.permute.xlu1 %2828 }
0x1983   : > { %v2830_v25 = vunpack.i.l.bf16 %v2829_v30  ;;  %v2831_v55 = vunpack.i.h.bf16 %v2829_v30 }
0x1986   : > { %v1520_v18 = vpop.permute.xlu1 %1519 }
0x1987   : > { %v1526_v21 = vsel %vm3539_vm13, %v2830_v25, %v1520_v18 }
0x1988   : > { %v1528_v35 = vmul.f32 %v1526_v21, %v1506_v33 }
0x198a   : > { %v1530_v42 = vsel %vm3551_vm6, %v1528_v35, 0.0 }
0x19dd   : > { %v2235_v9 = vpop.xlane.xlu0 %2234 }
0x19de   : > { %v2239_v10 = vmul.f32 0.03125, %v2235_v9 }
0x19e0   : > { %v2241_v14 = vadd.f32 1e-05, %v2239_v10  ;;  %v2267_v10 = vld [vmem:[%s3661_s14] sm:$0x1] }
0x19e1   : > { %v2238_v40 = vpop.xlane.xlu0 %2237 }
0x19e2   : > { %2873 = vrsqrt.f32 %v2241_v14  ;;  %v2240_v1 = vmul.f32 0.03125, %v2238_v40 }
0x19e4   : > { %v2242_v19 = vadd.f32 1e-05, %v2240_v1 }
0x19e6   : > { %2875 = vrsqrt.f32 %v2242_v19 }
0x19e9   : > { %v986_v36 = vpop.permute.xlu0 %985 }
0x19ea   : > { %v993_v39 = vsel %vm970_vm5, %v2811_v22, %v986_v36 }
0x19eb   : > { %v1015_v6 = vmul.f32 %v1013_v37, %v993_v39 }
0x19ed   : > { %v1017_v43 = vsel %vm3557_vm7, %v1015_v6, 0.0  ;;  %v1504_v44 = vpop.permute.xlu0 %1503 }
0x19ee   : > { %v1532_v7 = vadd.f32 %v1530_v42, %v1017_v43  ;;  %v1507_v11 = vsel %vm1483_vm14, %v2824_v56, %v1504_v44 }
0x19ef   : > { %v2874_v49 = vpop.eup %2873 }
0x19f0   : > { %v2245_v46 = vmul.f32 %v2874_v49, %v3515_v41  ;;  %2326 = vst.msk [vmem:[%s3568_s20] sm:$0xff] %vm2325_vm8, %v1532_v7 }
0x19f2   : > { %v2247_v51 = vmul.f32 %v2879_v60, %v2245_v46  ;;  %v1011_v61 = vpop.permute.xlu0 %1010 }
0x19f3   : > { %v2876_v52 = vpop.eup %2875  ;;  %v1014_v47 = vsel %vm3546_vm1, %v2818_v50, %v1011_v61 }
0x19f4   : > { %v2246_v54 = vmul.f32 %v2876_v52, %v3519_v45  ;;  %v2249_v12 = vadd.f32 %v2880_v28, %v2247_v51  ;;  %v1016_v41 = vmul.f32 %v1014_v47, %v994_v27 }
0x19f6   : > { %v2248_v48 = vmul.f32 %v2879_v60, %v2246_v54  ;;  %v1524_v15 = vpop.permute.xlu0 %1523  ;;  %v1018_v0 = vsel %vm3557_vm7, %v1016_v41, 0.0  ;;  %v2251_v26 = vsel %vm689_vm3, %v2249_v12, 0.0 }
0x19f7   : > { %v1527_v58 = vsel %vm3539_vm13, %v2831_v55, %v1524_v15 }
0x19f8   : > { %v2250_v45 = vadd.f32 %v2880_v28, %v2248_v48  ;;  %v1529_v59 = vmul.f32 %v1527_v58, %v1507_v11 }
0x19fa   : > { %v1531_v62 = vsel %vm3551_vm6, %v1529_v59, 0.0  ;;  %v2252_v63 = vsel %vm689_vm3, %v2250_v45, 0.0 }
0x19fb   : > { %v1533_v31 = vadd.f32 %v1531_v62, %v1018_v0  ;;  %v2253_v2 = vadd.f32 %v2252_v63, %v2251_v26 }
0x19fd   : > { %2327 = vst.msk [vmem:[%s3568_s20 + $0x8] sm:$0xff] %vm2325_vm8, %v1533_v31  ;;  %v2254_v3 = vrot.slane %v2253_v2, 4  ;;  %s2887_s20 = scalar_lea.vmem %s2886_s1, 32 }
0x19fe   : > { %p2889_p1 = scmp.lt.s32.totalorder %s2887_s20, %s2881_s25 }
0x19ff   : > { %v2255_v4 = vadd.f32 %v2254_v3, %v2253_v2 }
0x1a00   : > { %p2890_p2 = por %p2889_p1, %p2888_p0 }
0x1a01   : > { %v2256_v24 = vrot.slane %v2255_v4, 2 }
0x1a02   : > { %p2891_p3 = pnand %p2890_p2, %p2884_p13 }
0x1a03   : > { %v2257_v5 = vadd.f32 %v2256_v24, %v2255_v4 }
0x1a05   : > { %v2258_v8 = vrot.slane %v2257_v5, 1 }
0x1a07   : > { %v2259_v29 = vadd.f32 %v2258_v8, %v2257_v5 }
0x1a09   : > { %v2261_v30 = vmul.f32 0.0625, %v2259_v29 }
0x1a0b   : > { %v2266_v9 = vpack.c.bf16 %v2261_v30, %v2261_v30 }
0x1a0d   : > { %2746 = vmatmul.mubr.msk.bf16.vlgmr.msra.gmra.mxu0 %vm689_vm3, %v2266_v9 }
0x1acd   : > { %v2317_v13 = vpop.f32.mrf.mxu0 }
0x1ace   : > { %v2318_v14 = vadd.f32 %v2317_v13, %v2267_v10 }
0x1acf   : > { %v2747_v16 = vpop.f32.mrf.mxu0 }
0x1ad0   : > { %2324 = vst.msk [vmem:[%s544_s28] sm:$0x1] %vm2323_vm9, %v2318_v14 }
0x1ad1   : > { %v2320_v40 = vpop.f32.mrf.mxu0 }
0x1ad2   : > { %2894 = shalt.err (!%p2891_p3)
}
0x1ad3   : > { %s2895_s19 = scalar_lea.hbm %s3606_s29, 16  ;;  %s2899_s26 = scalar_lea.hbm %s3662_s15, 32 }
0x1ad4   : > { %p2896_p4 = scmp.ne.s32.totalorder %s3606_s29, %s2895_s19  ;;  %p2900_p9 = scmp.lt.s32.totalorder %s3606_s29, %s3662_s15 }
0x1ad5   : > { %p2901_p10 = scmp.lt.s32.totalorder %s2899_s26, %s2895_s19 }
0x1ad6   : > { %p2897_p7 = pnand %p2896_p4, %p3074_p5 }
0x1ad7   : > { %p2902_p11 = por %p2901_p10, %p2900_p9 }
0x1ad8   : > { %p2898_p8 = pneg %p2897_p7 }
0x1ada   : > { %p2903_p12 = pnand %p2902_p11, %p2898_p8 }
0x1adc   : > { %2906 = shalt.err (!%p2903_p12)
}
0x1add   : > { %2750 = dma.vmem_to_hbm [thread:$0]  (%p3074_p5), %s3608_s4, 16, %s3606_s29, %s2329_s30   ;;  %v2748_v1 = vpop.f32.mrf.mxu0 }
0x1ade PF: > { %p2756_p13 = scmp.ge.s32.totalorder %s2941_s24, 2  ;;  %s2361_s1 = sand.u32 1, %s2929_s21  }
0x1adf   : > { %s2362_s2 = scalar_lea.sflag [#allocation3], %s2361_s1 }
0x1ae0   : > { %p2753_p0 = pnand %p2756_p13, %p3078_p6 }
0x1ae2   : > { %p2754_p1 = pneg %p2753_p0 }
0x1ae4   : > { %2924 = dma.done.wait (%p2754_p1), %s2362_s2, 16  }
0x1ae5   : > { %2926 = vsyncadd (%p2754_p1), %s2362_s2, 4294967280  ;;  %s3694_s0 = sld [smem:[#allocation5_spill]]  ;;  %p27_p2 = scmp.ge.s32.totalorder %s3061_s27, 4  }
0x1ae6   : > { %s3695_s21 = smov %s2933_s22  ;;  %s3696_s22 = smov %s2937_s23 }
0x1ae7   : > { %s3698_s24 = smov %s3061_s27  ;;  %29 = sbr.rel (!%p27_p2) target bundleno = 9 (0x9), region = 139 }
0x1aeb   : > { %s3697_s23 = smov %s3694_s0 }
0x1aec   :  { %2374 = vsyncpa [#allocation3], 1 }
0x1aed   :  { %2376 = vsyncpa [#allocation3 + $0x1], 1 }

</bundles_post_ra>
